<compile_context>
chip_gen: v7x
topology: tpu7x:2x2x1
jax: 0.10.0
libtpu: 0.0.40
codegen_flags: <defaults>
</compile_context>

<pallas_src>
import jax
import jax.numpy as jnp
from jax.experimental import pallas as pl
from jax.experimental.pallas import tpu as pltpu

IN_SIZE = 2
MID_SIZE = 16
OUT_SIZE = 2
LANE = 128
MAX_SUBLANES_PER_STEP = 256  # up to 256 * 128 = 32768 batch rows per grid step

# per-head packed parameter length: w1(2x16) + b1(16) + w2(16x2) + b2(2) = 82
_HEAD_LEN = IN_SIZE * MID_SIZE + MID_SIZE + MID_SIZE * OUT_SIZE + OUT_SIZE


def _round_up(a, b):
    return (a + b - 1) // b * b


def mdn_kernel(params_ref, x_ref, out_ref):
    """params_ref: (164,) f32 in SMEM.
    x_ref:   (2, TS, 128)  -- x[feature, sublane, lane], batch is lane-dense.
    out_ref: (4, TS, 128)  -- rows: mu0, mu1, sigma0, sigma1.
    """
    x0 = x_ref[0, :, :]
    x1 = x_ref[1, :, :]

    def head(base):
        w1 = base                          # (IN, MID) row-major
        b1 = base + IN_SIZE * MID_SIZE     # (MID,)
        w2 = b1 + MID_SIZE                 # (MID, OUT) row-major
        b2 = w2 + MID_SIZE * OUT_SIZE      # (OUT,)
        acc0 = jnp.zeros_like(x0)
        acc1 = jnp.zeros_like(x0)
        # 16 hidden units: broadcast-FMA on the VPU; weights are SMEM scalars.
        for m in range(MID_SIZE):
            h = jnp.maximum(
                params_ref[w1 + m] * x0
                + params_ref[w1 + MID_SIZE + m] * x1
                + params_ref[b1 + m],
                0.0,
            )
            acc0 = acc0 + params_ref[w2 + OUT_SIZE * m] * h
            acc1 = acc1 + params_ref[w2 + OUT_SIZE * m + 1] * h
        return acc0 + params_ref[b2], acc1 + params_ref[b2 + 1]

    mu0, mu1 = head(0)
    s0, s1 = head(_HEAD_LEN)

    out_ref[0, :, :] = mu0
    out_ref[1, :, :] = mu1
    # softplus (beta=1), numerically stable; exp/log go to the EUP slot.
    out_ref[2, :, :] = jnp.logaddexp(s0, 0.0)
    out_ref[3, :, :] = jnp.logaddexp(s1, 0.0)


def pack_params(p):
    """Flatten all weights/biases into one (164,) f32 vector (mu head, then sigma)."""
    def head(sfx):
        return [p[f"w1_{sfx}"].reshape(-1), p[f"b1_{sfx}"].reshape(-1),
                p[f"w2_{sfx}"].reshape(-1), p[f"b2_{sfx}"].reshape(-1)]
    return jnp.concatenate(head("mu") + head("sigma")).astype(jnp.float32)


def generative_mdn_forward(yz, params):
    """yz: (N, 2) float32. Returns (mu, sigma), each (N, 2)."""
    N = yz.shape[0]
    packed = pack_params(params)

    # Rows per grid step: lane-aligned (multiple of 8*128), capped for VMEM safety
    # (block bytes per step: in 2*TS*128*4 + out 4*TS*128*4, double buffered -> <2 MiB).
    rows_per_step = min(MAX_SUBLANES_PER_STEP * LANE, _round_up(N, 8 * LANE))
    n_pad = _round_up(N, rows_per_step)
    ts = rows_per_step // LANE
    grid = (n_pad // rows_per_step,)

    # Lane-dense layout: (N,2) -> pad -> (2, N_pad) -> (2, N_pad//128, 128).
    x = jnp.pad(yz.astype(jnp.float32), ((0, n_pad - N), (0, 0)))
    x = x.T.reshape(IN_SIZE, n_pad // LANE, LANE)

    out = pl.pallas_call(
        mdn_kernel,
        grid_spec=pltpu.PrefetchScalarGridSpec(
            num_scalar_prefetch=0,
            grid=grid,
            in_specs=[
                pl.BlockSpec(memory_space=pltpu.MemorySpace.SMEM),   # packed params
                pl.BlockSpec((IN_SIZE, ts, LANE), lambda i: (0, i, 0)),
            ],
            out_specs=pl.BlockSpec((2 * OUT_SIZE, ts, LANE), lambda i: (0, i, 0)),
        ),
        out_shape=jax.ShapeDtypeStruct((2 * OUT_SIZE, n_pad // LANE, LANE), jnp.float32),
        compiler_params=pltpu.CompilerParams(
            dimension_semantics=("parallel",),
        ),
    )(packed, x)

    out = out.reshape(2 * OUT_SIZE, n_pad)
    mu = out[:OUT_SIZE, :N].T
    sigma = out[OUT_SIZE:, :N].T
    return mu, sigma


def init_params(key):
    """Deterministic parameter init (Kaiming-uniform-like), stored as (in, out)."""
    ks = jax.random.split(key, 8)

    def linear(kw, kb, fan_in, fan_out):
        bound = 1.0 / jnp.sqrt(fan_in)
        w = jax.random.uniform(kw, (fan_in, fan_out), jnp.float32, -bound, bound)
        b = jax.random.uniform(kb, (1, fan_out), jnp.float32, -bound, bound)
        return w, b

    w1m, b1m = linear(ks[0], ks[1], IN_SIZE, MID_SIZE)
    w2m, b2m = linear(ks[2], ks[3], MID_SIZE, OUT_SIZE)
    w1s, b1s = linear(ks[4], ks[5], IN_SIZE, MID_SIZE)
    w2s, b2s = linear(ks[6], ks[7], MID_SIZE, OUT_SIZE)
    return {
        "w1_mu": w1m, "b1_mu": b1m, "w2_mu": w2m, "b2_mu": b2m,
        "w1_sigma": w1s, "b1_sigma": b1s, "w2_sigma": w2s, "b2_sigma": b2s,
    }


def reference_forward(yz, p):
    h_mu = jnp.maximum(yz @ p["w1_mu"] + p["b1_mu"], 0.0)
    mu = h_mu @ p["w2_mu"] + p["b2_mu"]
    h_s = jnp.maximum(yz @ p["w1_sigma"] + p["b1_sigma"], 0.0)
    sigma = jnp.logaddexp(h_s @ p["w2_sigma"] + p["b2_sigma"], 0.0)
    return mu, sigma


if __name__ == "__main__":
    key = jax.random.PRNGKey(0)
    k_params, k_x = jax.random.split(key)
    params = init_params(k_params)

    N = 16  # small batch; any N works (wrapper pads internally)
    yz = jax.random.normal(k_x, (N, IN_SIZE), dtype=jnp.float32)

    mu, sigma = generative_mdn_forward(yz, params)
    mu, sigma = jax.block_until_ready(mu), jax.block_until_ready(sigma)

    mu_ref, sigma_ref = reference_forward(yz, params)
    assert mu.shape == (N, OUT_SIZE) and sigma.shape == (N, OUT_SIZE)
    assert jnp.allclose(mu, mu_ref, atol=1e-5, rtol=1e-5)
    assert jnp.allclose(sigma, sigma_ref, atol=1e-5, rtol=1e-5)
    assert bool(jnp.all(sigma > 0))

    print("KERNEL_OK")
</pallas_src>

<mosaic_0001>
module attributes {stable_mosaic.version = 11 : i64} {
  func.func @mdn_kernel(%arg0: i32, %arg1: memref<164xf32, #tpu.memory_space<smem>>, %arg2: memref<2x8x128xf32, #tpu.memory_space<vmem>>, %arg3: memref<4x8x128xf32, #tpu.memory_space<vmem>>) attributes {dimension_semantics = [#tpu.dimension_semantics<parallel>], iteration_bounds = array<i64: 1>, scalar_prefetch = 0 : i64, scratch_operands = 0 : i64, tpu.core_type = #tpu.core_type<tc>, window_params = [{transform_indices = @transform_0, window_bounds = array<i64: 164>}, {transform_indices = @transform_1, window_bounds = array<i64: 2, 8, 128>}, {transform_indices = @transform_2, window_bounds = array<i64: 4, 8, 128>}]} {
    %c0 = arith.constant 0 : index
    %c0_0 = arith.constant 0 : index
    %c0_1 = arith.constant 0 : index
    %0 = vector.load %arg2[%c0, %c0_0, %c0_1] : memref<2x8x128xf32, #tpu.memory_space<vmem>>, vector<1x8x128xf32>
    %1 = vector.shape_cast %0 : vector<1x8x128xf32> to vector<8x128xf32>
    %c1 = arith.constant 1 : index
    %c0_2 = arith.constant 0 : index
    %c0_3 = arith.constant 0 : index
    %2 = vector.load %arg2[%c1, %c0_2, %c0_3] : memref<2x8x128xf32, #tpu.memory_space<vmem>>, vector<1x8x128xf32>
    %3 = vector.shape_cast %2 : vector<1x8x128xf32> to vector<8x128xf32>
    %cst = arith.constant 0.000000e+00 : f32
    %4 = vector.broadcast %cst : f32 to vector<8x128xf32>
    %cst_4 = arith.constant 0.000000e+00 : f32
    %5 = vector.broadcast %cst_4 : f32 to vector<8x128xf32>
    %c0_5 = arith.constant 0 : index
    %6 = memref.load %arg1[%c0_5] : memref<164xf32, #tpu.memory_space<smem>>
    %7 = vector.broadcast %6 : f32 to vector<8x128xf32>
    %8 = arith.mulf %7, %1 : vector<8x128xf32>
    %c16 = arith.constant 16 : index
    %9 = memref.load %arg1[%c16] : memref<164xf32, #tpu.memory_space<smem>>
    %10 = vector.broadcast %9 : f32 to vector<8x128xf32>
    %11 = arith.mulf %10, %3 : vector<8x128xf32>
    %12 = arith.addf %8, %11 : vector<8x128xf32>
    %c32 = arith.constant 32 : index
    %13 = memref.load %arg1[%c32] : memref<164xf32, #tpu.memory_space<smem>>
    %14 = vector.broadcast %13 : f32 to vector<8x128xf32>
    %15 = arith.addf %12, %14 : vector<8x128xf32>
    %cst_6 = arith.constant 0.000000e+00 : f32
    %16 = vector.broadcast %cst_6 : f32 to vector<8x128xf32>
    %17 = arith.maximumf %15, %16 : vector<8x128xf32>
    %c48 = arith.constant 48 : index
    %18 = memref.load %arg1[%c48] : memref<164xf32, #tpu.memory_space<smem>>
    %19 = vector.broadcast %18 : f32 to vector<8x128xf32>
    %20 = arith.mulf %19, %17 : vector<8x128xf32>
    %21 = arith.addf %4, %20 : vector<8x128xf32>
    %c49 = arith.constant 49 : index
    %22 = memref.load %arg1[%c49] : memref<164xf32, #tpu.memory_space<smem>>
    %23 = vector.broadcast %22 : f32 to vector<8x128xf32>
    %24 = arith.mulf %23, %17 : vector<8x128xf32>
    %25 = arith.addf %5, %24 : vector<8x128xf32>
    %c1_7 = arith.constant 1 : index
    %26 = memref.load %arg1[%c1_7] : memref<164xf32, #tpu.memory_space<smem>>
    %27 = vector.broadcast %26 : f32 to vector<8x128xf32>
    %28 = arith.mulf %27, %1 : vector<8x128xf32>
    %c17 = arith.constant 17 : index
    %29 = memref.load %arg1[%c17] : memref<164xf32, #tpu.memory_space<smem>>
    %30 = vector.broadcast %29 : f32 to vector<8x128xf32>
    %31 = arith.mulf %30, %3 : vector<8x128xf32>
    %32 = arith.addf %28, %31 : vector<8x128xf32>
    %c33 = arith.constant 33 : index
    %33 = memref.load %arg1[%c33] : memref<164xf32, #tpu.memory_space<smem>>
    %34 = vector.broadcast %33 : f32 to vector<8x128xf32>
    %35 = arith.addf %32, %34 : vector<8x128xf32>
    %cst_8 = arith.constant 0.000000e+00 : f32
    %36 = vector.broadcast %cst_8 : f32 to vector<8x128xf32>
    %37 = arith.maximumf %35, %36 : vector<8x128xf32>
    %c50 = arith.constant 50 : index
    %38 = memref.load %arg1[%c50] : memref<164xf32, #tpu.memory_space<smem>>
    %39 = vector.broadcast %38 : f32 to vector<8x128xf32>
    %40 = arith.mulf %39, %37 : vector<8x128xf32>
    %41 = arith.addf %21, %40 : vector<8x128xf32>
    %c51 = arith.constant 51 : index
    %42 = memref.load %arg1[%c51] : memref<164xf32, #tpu.memory_space<smem>>
    %43 = vector.broadcast %42 : f32 to vector<8x128xf32>
    %44 = arith.mulf %43, %37 : vector<8x128xf32>
    %45 = arith.addf %25, %44 : vector<8x128xf32>
    %c2 = arith.constant 2 : index
    %46 = memref.load %arg1[%c2] : memref<164xf32, #tpu.memory_space<smem>>
    %47 = vector.broadcast %46 : f32 to vector<8x128xf32>
    %48 = arith.mulf %47, %1 : vector<8x128xf32>
    %c18 = arith.constant 18 : index
    %49 = memref.load %arg1[%c18] : memref<164xf32, #tpu.memory_space<smem>>
    %50 = vector.broadcast %49 : f32 to vector<8x128xf32>
    %51 = arith.mulf %50, %3 : vector<8x128xf32>
    %52 = arith.addf %48, %51 : vector<8x128xf32>
    %c34 = arith.constant 34 : index
    %53 = memref.load %arg1[%c34] : memref<164xf32, #tpu.memory_space<smem>>
    %54 = vector.broadcast %53 : f32 to vector<8x128xf32>
    %55 = arith.addf %52, %54 : vector<8x128xf32>
    %cst_9 = arith.constant 0.000000e+00 : f32
    %56 = vector.broadcast %cst_9 : f32 to vector<8x128xf32>
    %57 = arith.maximumf %55, %56 : vector<8x128xf32>
    %c52 = arith.constant 52 : index
    %58 = memref.load %arg1[%c52] : memref<164xf32, #tpu.memory_space<smem>>
    %59 = vector.broadcast %58 : f32 to vector<8x128xf32>
    %60 = arith.mulf %59, %57 : vector<8x128xf32>
    %61 = arith.addf %41, %60 : vector<8x128xf32>
    %c53 = arith.constant 53 : index
    %62 = memref.load %arg1[%c53] : memref<164xf32, #tpu.memory_space<smem>>
    %63 = vector.broadcast %62 : f32 to vector<8x128xf32>
    %64 = arith.mulf %63, %57 : vector<8x128xf32>
    %65 = arith.addf %45, %64 : vector<8x128xf32>
    %c3 = arith.constant 3 : index
    %66 = memref.load %arg1[%c3] : memref<164xf32, #tpu.memory_space<smem>>
    %67 = vector.broadcast %66 : f32 to vector<8x128xf32>
    %68 = arith.mulf %67, %1 : vector<8x128xf32>
    %c19 = arith.constant 19 : index
    %69 = memref.load %arg1[%c19] : memref<164xf32, #tpu.memory_space<smem>>
    %70 = vector.broadcast %69 : f32 to vector<8x128xf32>
    %71 = arith.mulf %70, %3 : vector<8x128xf32>
    %72 = arith.addf %68, %71 : vector<8x128xf32>
    %c35 = arith.constant 35 : index
    %73 = memref.load %arg1[%c35] : memref<164xf32, #tpu.memory_space<smem>>
    %74 = vector.broadcast %73 : f32 to vector<8x128xf32>
    %75 = arith.addf %72, %74 : vector<8x128xf32>
    %cst_10 = arith.constant 0.000000e+00 : f32
    %76 = vector.broadcast %cst_10 : f32 to vector<8x128xf32>
    %77 = arith.maximumf %75, %76 : vector<8x128xf32>
    %c54 = arith.constant 54 : index
    %78 = memref.load %arg1[%c54] : memref<164xf32, #tpu.memory_space<smem>>
    %79 = vector.broadcast %78 : f32 to vector<8x128xf32>
    %80 = arith.mulf %79, %77 : vector<8x128xf32>
    %81 = arith.addf %61, %80 : vector<8x128xf32>
    %c55 = arith.constant 55 : index
    %82 = memref.load %arg1[%c55] : memref<164xf32, #tpu.memory_space<smem>>
    %83 = vector.broadcast %82 : f32 to vector<8x128xf32>
    %84 = arith.mulf %83, %77 : vector<8x128xf32>
    %85 = arith.addf %65, %84 : vector<8x128xf32>
    %c4 = arith.constant 4 : index
    %86 = memref.load %arg1[%c4] : memref<164xf32, #tpu.memory_space<smem>>
    %87 = vector.broadcast %86 : f32 to vector<8x128xf32>
    %88 = arith.mulf %87, %1 : vector<8x128xf32>
    %c20 = arith.constant 20 : index
    %89 = memref.load %arg1[%c20] : memref<164xf32, #tpu.memory_space<smem>>
    %90 = vector.broadcast %89 : f32 to vector<8x128xf32>
    %91 = arith.mulf %90, %3 : vector<8x128xf32>
    %92 = arith.addf %88, %91 : vector<8x128xf32>
    %c36 = arith.constant 36 : index
    %93 = memref.load %arg1[%c36] : memref<164xf32, #tpu.memory_space<smem>>
    %94 = vector.broadcast %93 : f32 to vector<8x128xf32>
    %95 = arith.addf %92, %94 : vector<8x128xf32>
    %cst_11 = arith.constant 0.000000e+00 : f32
    %96 = vector.broadcast %cst_11 : f32 to vector<8x128xf32>
    %97 = arith.maximumf %95, %96 : vector<8x128xf32>
    %c56 = arith.constant 56 : index
    %98 = memref.load %arg1[%c56] : memref<164xf32, #tpu.memory_space<smem>>
    %99 = vector.broadcast %98 : f32 to vector<8x128xf32>
    %100 = arith.mulf %99, %97 : vector<8x128xf32>
    %101 = arith.addf %81, %100 : vector<8x128xf32>
    %c57 = arith.constant 57 : index
    %102 = memref.load %arg1[%c57] : memref<164xf32, #tpu.memory_space<smem>>
    %103 = vector.broadcast %102 : f32 to vector<8x128xf32>
    %104 = arith.mulf %103, %97 : vector<8x128xf32>
    %105 = arith.addf %85, %104 : vector<8x128xf32>
    %c5 = arith.constant 5 : index
    %106 = memref.load %arg1[%c5] : memref<164xf32, #tpu.memory_space<smem>>
    %107 = vector.broadcast %106 : f32 to vector<8x128xf32>
    %108 = arith.mulf %107, %1 : vector<8x128xf32>
    %c21 = arith.constant 21 : index
    %109 = memref.load %arg1[%c21] : memref<164xf32, #tpu.memory_space<smem>>
    %110 = vector.broadcast %109 : f32 to vector<8x128xf32>
    %111 = arith.mulf %110, %3 : vector<8x128xf32>
    %112 = arith.addf %108, %111 : vector<8x128xf32>
    %c37 = arith.constant 37 : index
    %113 = memref.load %arg1[%c37] : memref<164xf32, #tpu.memory_space<smem>>
    %114 = vector.broadcast %113 : f32 to vector<8x128xf32>
    %115 = arith.addf %112, %114 : vector<8x128xf32>
    %cst_12 = arith.constant 0.000000e+00 : f32
    %116 = vector.broadcast %cst_12 : f32 to vector<8x128xf32>
    %117 = arith.maximumf %115, %116 : vector<8x128xf32>
    %c58 = arith.constant 58 : index
    %118 = memref.load %arg1[%c58] : memref<164xf32, #tpu.memory_space<smem>>
    %119 = vector.broadcast %118 : f32 to vector<8x128xf32>
    %120 = arith.mulf %119, %117 : vector<8x128xf32>
    %121 = arith.addf %101, %120 : vector<8x128xf32>
    %c59 = arith.constant 59 : index
    %122 = memref.load %arg1[%c59] : memref<164xf32, #tpu.memory_space<smem>>
    %123 = vector.broadcast %122 : f32 to vector<8x128xf32>
    %124 = arith.mulf %123, %117 : vector<8x128xf32>
    %125 = arith.addf %105, %124 : vector<8x128xf32>
    %c6 = arith.constant 6 : index
    %126 = memref.load %arg1[%c6] : memref<164xf32, #tpu.memory_space<smem>>
    %127 = vector.broadcast %126 : f32 to vector<8x128xf32>
    %128 = arith.mulf %127, %1 : vector<8x128xf32>
    %c22 = arith.constant 22 : index
    %129 = memref.load %arg1[%c22] : memref<164xf32, #tpu.memory_space<smem>>
    %130 = vector.broadcast %129 : f32 to vector<8x128xf32>
    %131 = arith.mulf %130, %3 : vector<8x128xf32>
    %132 = arith.addf %128, %131 : vector<8x128xf32>
    %c38 = arith.constant 38 : index
    %133 = memref.load %arg1[%c38] : memref<164xf32, #tpu.memory_space<smem>>
    %134 = vector.broadcast %133 : f32 to vector<8x128xf32>
    %135 = arith.addf %132, %134 : vector<8x128xf32>
    %cst_13 = arith.constant 0.000000e+00 : f32
    %136 = vector.broadcast %cst_13 : f32 to vector<8x128xf32>
    %137 = arith.maximumf %135, %136 : vector<8x128xf32>
    %c60 = arith.constant 60 : index
    %138 = memref.load %arg1[%c60] : memref<164xf32, #tpu.memory_space<smem>>
    %139 = vector.broadcast %138 : f32 to vector<8x128xf32>
    %140 = arith.mulf %139, %137 : vector<8x128xf32>
    %141 = arith.addf %121, %140 : vector<8x128xf32>
    %c61 = arith.constant 61 : index
    %142 = memref.load %arg1[%c61] : memref<164xf32, #tpu.memory_space<smem>>
    %143 = vector.broadcast %142 : f32 to vector<8x128xf32>
    %144 = arith.mulf %143, %137 : vector<8x128xf32>
    %145 = arith.addf %125, %144 : vector<8x128xf32>
    %c7 = arith.constant 7 : index
    %146 = memref.load %arg1[%c7] : memref<164xf32, #tpu.memory_space<smem>>
    %147 = vector.broadcast %146 : f32 to vector<8x128xf32>
    %148 = arith.mulf %147, %1 : vector<8x128xf32>
    %c23 = arith.constant 23 : index
    %149 = memref.load %arg1[%c23] : memref<164xf32, #tpu.memory_space<smem>>
    %150 = vector.broadcast %149 : f32 to vector<8x128xf32>
    %151 = arith.mulf %150, %3 : vector<8x128xf32>
    %152 = arith.addf %148, %151 : vector<8x128xf32>
    %c39 = arith.constant 39 : index
    %153 = memref.load %arg1[%c39] : memref<164xf32, #tpu.memory_space<smem>>
    %154 = vector.broadcast %153 : f32 to vector<8x128xf32>
    %155 = arith.addf %152, %154 : vector<8x128xf32>
    %cst_14 = arith.constant 0.000000e+00 : f32
    %156 = vector.broadcast %cst_14 : f32 to vector<8x128xf32>
    %157 = arith.maximumf %155, %156 : vector<8x128xf32>
    %c62 = arith.constant 62 : index
    %158 = memref.load %arg1[%c62] : memref<164xf32, #tpu.memory_space<smem>>
    %159 = vector.broadcast %158 : f32 to vector<8x128xf32>
    %160 = arith.mulf %159, %157 : vector<8x128xf32>
    %161 = arith.addf %141, %160 : vector<8x128xf32>
    %c63 = arith.constant 63 : index
    %162 = memref.load %arg1[%c63] : memref<164xf32, #tpu.memory_space<smem>>
    %163 = vector.broadcast %162 : f32 to vector<8x128xf32>
    %164 = arith.mulf %163, %157 : vector<8x128xf32>
    %165 = arith.addf %145, %164 : vector<8x128xf32>
    %c8 = arith.constant 8 : index
    %166 = memref.load %arg1[%c8] : memref<164xf32, #tpu.memory_space<smem>>
    %167 = vector.broadcast %166 : f32 to vector<8x128xf32>
    %168 = arith.mulf %167, %1 : vector<8x128xf32>
    %c24 = arith.constant 24 : index
    %169 = memref.load %arg1[%c24] : memref<164xf32, #tpu.memory_space<smem>>
    %170 = vector.broadcast %169 : f32 to vector<8x128xf32>
    %171 = arith.mulf %170, %3 : vector<8x128xf32>
    %172 = arith.addf %168, %171 : vector<8x128xf32>
    %c40 = arith.constant 40 : index
    %173 = memref.load %arg1[%c40] : memref<164xf32, #tpu.memory_space<smem>>
    %174 = vector.broadcast %173 : f32 to vector<8x128xf32>
    %175 = arith.addf %172, %174 : vector<8x128xf32>
    %cst_15 = arith.constant 0.000000e+00 : f32
    %176 = vector.broadcast %cst_15 : f32 to vector<8x128xf32>
    %177 = arith.maximumf %175, %176 : vector<8x128xf32>
    %c64 = arith.constant 64 : index
    %178 = memref.load %arg1[%c64] : memref<164xf32, #tpu.memory_space<smem>>
    %179 = vector.broadcast %178 : f32 to vector<8x128xf32>
    %180 = arith.mulf %179, %177 : vector<8x128xf32>
    %181 = arith.addf %161, %180 : vector<8x128xf32>
    %c65 = arith.constant 65 : index
    %182 = memref.load %arg1[%c65] : memref<164xf32, #tpu.memory_space<smem>>
    %183 = vector.broadcast %182 : f32 to vector<8x128xf32>
    %184 = arith.mulf %183, %177 : vector<8x128xf32>
    %185 = arith.addf %165, %184 : vector<8x128xf32>
    %c9 = arith.constant 9 : index
    %186 = memref.load %arg1[%c9] : memref<164xf32, #tpu.memory_space<smem>>
    %187 = vector.broadcast %186 : f32 to vector<8x128xf32>
    %188 = arith.mulf %187, %1 : vector<8x128xf32>
    %c25 = arith.constant 25 : index
    %189 = memref.load %arg1[%c25] : memref<164xf32, #tpu.memory_space<smem>>
    %190 = vector.broadcast %189 : f32 to vector<8x128xf32>
    %191 = arith.mulf %190, %3 : vector<8x128xf32>
    %192 = arith.addf %188, %191 : vector<8x128xf32>
    %c41 = arith.constant 41 : index
    %193 = memref.load %arg1[%c41] : memref<164xf32, #tpu.memory_space<smem>>
    %194 = vector.broadcast %193 : f32 to vector<8x128xf32>
    %195 = arith.addf %192, %194 : vector<8x128xf32>
    %cst_16 = arith.constant 0.000000e+00 : f32
    %196 = vector.broadcast %cst_16 : f32 to vector<8x128xf32>
    %197 = arith.maximumf %195, %196 : vector<8x128xf32>
    %c66 = arith.constant 66 : index
    %198 = memref.load %arg1[%c66] : memref<164xf32, #tpu.memory_space<smem>>
    %199 = vector.broadcast %198 : f32 to vector<8x128xf32>
    %200 = arith.mulf %199, %197 : vector<8x128xf32>
    %201 = arith.addf %181, %200 : vector<8x128xf32>
    %c67 = arith.constant 67 : index
    %202 = memref.load %arg1[%c67] : memref<164xf32, #tpu.memory_space<smem>>
    %203 = vector.broadcast %202 : f32 to vector<8x128xf32>
    %204 = arith.mulf %203, %197 : vector<8x128xf32>
    %205 = arith.addf %185, %204 : vector<8x128xf32>
    %c10 = arith.constant 10 : index
    %206 = memref.load %arg1[%c10] : memref<164xf32, #tpu.memory_space<smem>>
    %207 = vector.broadcast %206 : f32 to vector<8x128xf32>
    %208 = arith.mulf %207, %1 : vector<8x128xf32>
    %c26 = arith.constant 26 : index
    %209 = memref.load %arg1[%c26] : memref<164xf32, #tpu.memory_space<smem>>
    %210 = vector.broadcast %209 : f32 to vector<8x128xf32>
    %211 = arith.mulf %210, %3 : vector<8x128xf32>
    %212 = arith.addf %208, %211 : vector<8x128xf32>
    %c42 = arith.constant 42 : index
    %213 = memref.load %arg1[%c42] : memref<164xf32, #tpu.memory_space<smem>>
    %214 = vector.broadcast %213 : f32 to vector<8x128xf32>
    %215 = arith.addf %212, %214 : vector<8x128xf32>
    %cst_17 = arith.constant 0.000000e+00 : f32
    %216 = vector.broadcast %cst_17 : f32 to vector<8x128xf32>
    %217 = arith.maximumf %215, %216 : vector<8x128xf32>
    %c68 = arith.constant 68 : index
    %218 = memref.load %arg1[%c68] : memref<164xf32, #tpu.memory_space<smem>>
    %219 = vector.broadcast %218 : f32 to vector<8x128xf32>
    %220 = arith.mulf %219, %217 : vector<8x128xf32>
    %221 = arith.addf %201, %220 : vector<8x128xf32>
    %c69 = arith.constant 69 : index
    %222 = memref.load %arg1[%c69] : memref<164xf32, #tpu.memory_space<smem>>
    %223 = vector.broadcast %222 : f32 to vector<8x128xf32>
    %224 = arith.mulf %223, %217 : vector<8x128xf32>
    %225 = arith.addf %205, %224 : vector<8x128xf32>
    %c11 = arith.constant 11 : index
    %226 = memref.load %arg1[%c11] : memref<164xf32, #tpu.memory_space<smem>>
    %227 = vector.broadcast %226 : f32 to vector<8x128xf32>
    %228 = arith.mulf %227, %1 : vector<8x128xf32>
    %c27 = arith.constant 27 : index
    %229 = memref.load %arg1[%c27] : memref<164xf32, #tpu.memory_space<smem>>
    %230 = vector.broadcast %229 : f32 to vector<8x128xf32>
    %231 = arith.mulf %230, %3 : vector<8x128xf32>
    %232 = arith.addf %228, %231 : vector<8x128xf32>
    %c43 = arith.constant 43 : index
    %233 = memref.load %arg1[%c43] : memref<164xf32, #tpu.memory_space<smem>>
    %234 = vector.broadcast %233 : f32 to vector<8x128xf32>
    %235 = arith.addf %232, %234 : vector<8x128xf32>
    %cst_18 = arith.constant 0.000000e+00 : f32
    %236 = vector.broadcast %cst_18 : f32 to vector<8x128xf32>
    %237 = arith.maximumf %235, %236 : vector<8x128xf32>
    %c70 = arith.constant 70 : index
    %238 = memref.load %arg1[%c70] : memref<164xf32, #tpu.memory_space<smem>>
    %239 = vector.broadcast %238 : f32 to vector<8x128xf32>
    %240 = arith.mulf %239, %237 : vector<8x128xf32>
    %241 = arith.addf %221, %240 : vector<8x128xf32>
    %c71 = arith.constant 71 : index
    %242 = memref.load %arg1[%c71] : memref<164xf32, #tpu.memory_space<smem>>
    %243 = vector.broadcast %242 : f32 to vector<8x128xf32>
    %244 = arith.mulf %243, %237 : vector<8x128xf32>
    %245 = arith.addf %225, %244 : vector<8x128xf32>
    %c12 = arith.constant 12 : index
    %246 = memref.load %arg1[%c12] : memref<164xf32, #tpu.memory_space<smem>>
    %247 = vector.broadcast %246 : f32 to vector<8x128xf32>
    %248 = arith.mulf %247, %1 : vector<8x128xf32>
    %c28 = arith.constant 28 : index
    %249 = memref.load %arg1[%c28] : memref<164xf32, #tpu.memory_space<smem>>
    %250 = vector.broadcast %249 : f32 to vector<8x128xf32>
    %251 = arith.mulf %250, %3 : vector<8x128xf32>
    %252 = arith.addf %248, %251 : vector<8x128xf32>
    %c44 = arith.constant 44 : index
    %253 = memref.load %arg1[%c44] : memref<164xf32, #tpu.memory_space<smem>>
    %254 = vector.broadcast %253 : f32 to vector<8x128xf32>
    %255 = arith.addf %252, %254 : vector<8x128xf32>
    %cst_19 = arith.constant 0.000000e+00 : f32
    %256 = vector.broadcast %cst_19 : f32 to vector<8x128xf32>
    %257 = arith.maximumf %255, %256 : vector<8x128xf32>
    %c72 = arith.constant 72 : index
    %258 = memref.load %arg1[%c72] : memref<164xf32, #tpu.memory_space<smem>>
    %259 = vector.broadcast %258 : f32 to vector<8x128xf32>
    %260 = arith.mulf %259, %257 : vector<8x128xf32>
    %261 = arith.addf %241, %260 : vector<8x128xf32>
    %c73 = arith.constant 73 : index
    %262 = memref.load %arg1[%c73] : memref<164xf32, #tpu.memory_space<smem>>
    %263 = vector.broadcast %262 : f32 to vector<8x128xf32>
    %264 = arith.mulf %263, %257 : vector<8x128xf32>
    %265 = arith.addf %245, %264 : vector<8x128xf32>
    %c13 = arith.constant 13 : index
    %266 = memref.load %arg1[%c13] : memref<164xf32, #tpu.memory_space<smem>>
    %267 = vector.broadcast %266 : f32 to vector<8x128xf32>
    %268 = arith.mulf %267, %1 : vector<8x128xf32>
    %c29 = arith.constant 29 : index
    %269 = memref.load %arg1[%c29] : memref<164xf32, #tpu.memory_space<smem>>
    %270 = vector.broadcast %269 : f32 to vector<8x128xf32>
    %271 = arith.mulf %270, %3 : vector<8x128xf32>
    %272 = arith.addf %268, %271 : vector<8x128xf32>
    %c45 = arith.constant 45 : index
    %273 = memref.load %arg1[%c45] : memref<164xf32, #tpu.memory_space<smem>>
    %274 = vector.broadcast %273 : f32 to vector<8x128xf32>
    %275 = arith.addf %272, %274 : vector<8x128xf32>
    %cst_20 = arith.constant 0.000000e+00 : f32
    %276 = vector.broadcast %cst_20 : f32 to vector<8x128xf32>
    %277 = arith.maximumf %275, %276 : vector<8x128xf32>
    %c74 = arith.constant 74 : index
    %278 = memref.load %arg1[%c74] : memref<164xf32, #tpu.memory_space<smem>>
    %279 = vector.broadcast %278 : f32 to vector<8x128xf32>
    %280 = arith.mulf %279, %277 : vector<8x128xf32>
    %281 = arith.addf %261, %280 : vector<8x128xf32>
    %c75 = arith.constant 75 : index
    %282 = memref.load %arg1[%c75] : memref<164xf32, #tpu.memory_space<smem>>
    %283 = vector.broadcast %282 : f32 to vector<8x128xf32>
    %284 = arith.mulf %283, %277 : vector<8x128xf32>
    %285 = arith.addf %265, %284 : vector<8x128xf32>
    %c14 = arith.constant 14 : index
    %286 = memref.load %arg1[%c14] : memref<164xf32, #tpu.memory_space<smem>>
    %287 = vector.broadcast %286 : f32 to vector<8x128xf32>
    %288 = arith.mulf %287, %1 : vector<8x128xf32>
    %c30 = arith.constant 30 : index
    %289 = memref.load %arg1[%c30] : memref<164xf32, #tpu.memory_space<smem>>
    %290 = vector.broadcast %289 : f32 to vector<8x128xf32>
    %291 = arith.mulf %290, %3 : vector<8x128xf32>
    %292 = arith.addf %288, %291 : vector<8x128xf32>
    %c46 = arith.constant 46 : index
    %293 = memref.load %arg1[%c46] : memref<164xf32, #tpu.memory_space<smem>>
    %294 = vector.broadcast %293 : f32 to vector<8x128xf32>
    %295 = arith.addf %292, %294 : vector<8x128xf32>
    %cst_21 = arith.constant 0.000000e+00 : f32
    %296 = vector.broadcast %cst_21 : f32 to vector<8x128xf32>
    %297 = arith.maximumf %295, %296 : vector<8x128xf32>
    %c76 = arith.constant 76 : index
    %298 = memref.load %arg1[%c76] : memref<164xf32, #tpu.memory_space<smem>>
    %299 = vector.broadcast %298 : f32 to vector<8x128xf32>
    %300 = arith.mulf %299, %297 : vector<8x128xf32>
    %301 = arith.addf %281, %300 : vector<8x128xf32>
    %c77 = arith.constant 77 : index
    %302 = memref.load %arg1[%c77] : memref<164xf32, #tpu.memory_space<smem>>
    %303 = vector.broadcast %302 : f32 to vector<8x128xf32>
    %304 = arith.mulf %303, %297 : vector<8x128xf32>
    %305 = arith.addf %285, %304 : vector<8x128xf32>
    %c15 = arith.constant 15 : index
    %306 = memref.load %arg1[%c15] : memref<164xf32, #tpu.memory_space<smem>>
    %307 = vector.broadcast %306 : f32 to vector<8x128xf32>
    %308 = arith.mulf %307, %1 : vector<8x128xf32>
    %c31 = arith.constant 31 : index
    %309 = memref.load %arg1[%c31] : memref<164xf32, #tpu.memory_space<smem>>
    %310 = vector.broadcast %309 : f32 to vector<8x128xf32>
    %311 = arith.mulf %310, %3 : vector<8x128xf32>
    %312 = arith.addf %308, %311 : vector<8x128xf32>
    %c47 = arith.constant 47 : index
    %313 = memref.load %arg1[%c47] : memref<164xf32, #tpu.memory_space<smem>>
    %314 = vector.broadcast %313 : f32 to vector<8x128xf32>
    %315 = arith.addf %312, %314 : vector<8x128xf32>
    %cst_22 = arith.constant 0.000000e+00 : f32
    %316 = vector.broadcast %cst_22 : f32 to vector<8x128xf32>
    %317 = arith.maximumf %315, %316 : vector<8x128xf32>
    %c78 = arith.constant 78 : index
    %318 = memref.load %arg1[%c78] : memref<164xf32, #tpu.memory_space<smem>>
    %319 = vector.broadcast %318 : f32 to vector<8x128xf32>
    %320 = arith.mulf %319, %317 : vector<8x128xf32>
    %321 = arith.addf %301, %320 : vector<8x128xf32>
    %c79 = arith.constant 79 : index
    %322 = memref.load %arg1[%c79] : memref<164xf32, #tpu.memory_space<smem>>
    %323 = vector.broadcast %322 : f32 to vector<8x128xf32>
    %324 = arith.mulf %323, %317 : vector<8x128xf32>
    %325 = arith.addf %305, %324 : vector<8x128xf32>
    %c80 = arith.constant 80 : index
    %326 = memref.load %arg1[%c80] : memref<164xf32, #tpu.memory_space<smem>>
    %327 = vector.broadcast %326 : f32 to vector<8x128xf32>
    %328 = arith.addf %321, %327 : vector<8x128xf32>
    %c81 = arith.constant 81 : index
    %329 = memref.load %arg1[%c81] : memref<164xf32, #tpu.memory_space<smem>>
    %330 = vector.broadcast %329 : f32 to vector<8x128xf32>
    %331 = arith.addf %325, %330 : vector<8x128xf32>
    %cst_23 = arith.constant 0.000000e+00 : f32
    %332 = vector.broadcast %cst_23 : f32 to vector<8x128xf32>
    %cst_24 = arith.constant 0.000000e+00 : f32
    %333 = vector.broadcast %cst_24 : f32 to vector<8x128xf32>
    %c82 = arith.constant 82 : index
    %334 = memref.load %arg1[%c82] : memref<164xf32, #tpu.memory_space<smem>>
    %335 = vector.broadcast %334 : f32 to vector<8x128xf32>
    %336 = arith.mulf %335, %1 : vector<8x128xf32>
    %c98 = arith.constant 98 : index
    %337 = memref.load %arg1[%c98] : memref<164xf32, #tpu.memory_space<smem>>
    %338 = vector.broadcast %337 : f32 to vector<8x128xf32>
    %339 = arith.mulf %338, %3 : vector<8x128xf32>
    %340 = arith.addf %336, %339 : vector<8x128xf32>
    %c114 = arith.constant 114 : index
    %341 = memref.load %arg1[%c114] : memref<164xf32, #tpu.memory_space<smem>>
    %342 = vector.broadcast %341 : f32 to vector<8x128xf32>
    %343 = arith.addf %340, %342 : vector<8x128xf32>
    %cst_25 = arith.constant 0.000000e+00 : f32
    %344 = vector.broadcast %cst_25 : f32 to vector<8x128xf32>
    %345 = arith.maximumf %343, %344 : vector<8x128xf32>
    %c130 = arith.constant 130 : index
    %346 = memref.load %arg1[%c130] : memref<164xf32, #tpu.memory_space<smem>>
    %347 = vector.broadcast %346 : f32 to vector<8x128xf32>
    %348 = arith.mulf %347, %345 : vector<8x128xf32>
    %349 = arith.addf %332, %348 : vector<8x128xf32>
    %c131 = arith.constant 131 : index
    %350 = memref.load %arg1[%c131] : memref<164xf32, #tpu.memory_space<smem>>
    %351 = vector.broadcast %350 : f32 to vector<8x128xf32>
    %352 = arith.mulf %351, %345 : vector<8x128xf32>
    %353 = arith.addf %333, %352 : vector<8x128xf32>
    %c83 = arith.constant 83 : index
    %354 = memref.load %arg1[%c83] : memref<164xf32, #tpu.memory_space<smem>>
    %355 = vector.broadcast %354 : f32 to vector<8x128xf32>
    %356 = arith.mulf %355, %1 : vector<8x128xf32>
    %c99 = arith.constant 99 : index
    %357 = memref.load %arg1[%c99] : memref<164xf32, #tpu.memory_space<smem>>
    %358 = vector.broadcast %357 : f32 to vector<8x128xf32>
    %359 = arith.mulf %358, %3 : vector<8x128xf32>
    %360 = arith.addf %356, %359 : vector<8x128xf32>
    %c115 = arith.constant 115 : index
    %361 = memref.load %arg1[%c115] : memref<164xf32, #tpu.memory_space<smem>>
    %362 = vector.broadcast %361 : f32 to vector<8x128xf32>
    %363 = arith.addf %360, %362 : vector<8x128xf32>
    %cst_26 = arith.constant 0.000000e+00 : f32
    %364 = vector.broadcast %cst_26 : f32 to vector<8x128xf32>
    %365 = arith.maximumf %363, %364 : vector<8x128xf32>
    %c132 = arith.constant 132 : index
    %366 = memref.load %arg1[%c132] : memref<164xf32, #tpu.memory_space<smem>>
    %367 = vector.broadcast %366 : f32 to vector<8x128xf32>
    %368 = arith.mulf %367, %365 : vector<8x128xf32>
    %369 = arith.addf %349, %368 : vector<8x128xf32>
    %c133 = arith.constant 133 : index
    %370 = memref.load %arg1[%c133] : memref<164xf32, #tpu.memory_space<smem>>
    %371 = vector.broadcast %370 : f32 to vector<8x128xf32>
    %372 = arith.mulf %371, %365 : vector<8x128xf32>
    %373 = arith.addf %353, %372 : vector<8x128xf32>
    %c84 = arith.constant 84 : index
    %374 = memref.load %arg1[%c84] : memref<164xf32, #tpu.memory_space<smem>>
    %375 = vector.broadcast %374 : f32 to vector<8x128xf32>
    %376 = arith.mulf %375, %1 : vector<8x128xf32>
    %c100 = arith.constant 100 : index
    %377 = memref.load %arg1[%c100] : memref<164xf32, #tpu.memory_space<smem>>
    %378 = vector.broadcast %377 : f32 to vector<8x128xf32>
    %379 = arith.mulf %378, %3 : vector<8x128xf32>
    %380 = arith.addf %376, %379 : vector<8x128xf32>
    %c116 = arith.constant 116 : index
    %381 = memref.load %arg1[%c116] : memref<164xf32, #tpu.memory_space<smem>>
    %382 = vector.broadcast %381 : f32 to vector<8x128xf32>
    %383 = arith.addf %380, %382 : vector<8x128xf32>
    %cst_27 = arith.constant 0.000000e+00 : f32
    %384 = vector.broadcast %cst_27 : f32 to vector<8x128xf32>
    %385 = arith.maximumf %383, %384 : vector<8x128xf32>
    %c134 = arith.constant 134 : index
    %386 = memref.load %arg1[%c134] : memref<164xf32, #tpu.memory_space<smem>>
    %387 = vector.broadcast %386 : f32 to vector<8x128xf32>
    %388 = arith.mulf %387, %385 : vector<8x128xf32>
    %389 = arith.addf %369, %388 : vector<8x128xf32>
    %c135 = arith.constant 135 : index
    %390 = memref.load %arg1[%c135] : memref<164xf32, #tpu.memory_space<smem>>
    %391 = vector.broadcast %390 : f32 to vector<8x128xf32>
    %392 = arith.mulf %391, %385 : vector<8x128xf32>
    %393 = arith.addf %373, %392 : vector<8x128xf32>
    %c85 = arith.constant 85 : index
    %394 = memref.load %arg1[%c85] : memref<164xf32, #tpu.memory_space<smem>>
    %395 = vector.broadcast %394 : f32 to vector<8x128xf32>
    %396 = arith.mulf %395, %1 : vector<8x128xf32>
    %c101 = arith.constant 101 : index
    %397 = memref.load %arg1[%c101] : memref<164xf32, #tpu.memory_space<smem>>
    %398 = vector.broadcast %397 : f32 to vector<8x128xf32>
    %399 = arith.mulf %398, %3 : vector<8x128xf32>
    %400 = arith.addf %396, %399 : vector<8x128xf32>
    %c117 = arith.constant 117 : index
    %401 = memref.load %arg1[%c117] : memref<164xf32, #tpu.memory_space<smem>>
    %402 = vector.broadcast %401 : f32 to vector<8x128xf32>
    %403 = arith.addf %400, %402 : vector<8x128xf32>
    %cst_28 = arith.constant 0.000000e+00 : f32
    %404 = vector.broadcast %cst_28 : f32 to vector<8x128xf32>
    %405 = arith.maximumf %403, %404 : vector<8x128xf32>
    %c136 = arith.constant 136 : index
    %406 = memref.load %arg1[%c136] : memref<164xf32, #tpu.memory_space<smem>>
    %407 = vector.broadcast %406 : f32 to vector<8x128xf32>
    %408 = arith.mulf %407, %405 : vector<8x128xf32>
    %409 = arith.addf %389, %408 : vector<8x128xf32>
    %c137 = arith.constant 137 : index
    %410 = memref.load %arg1[%c137] : memref<164xf32, #tpu.memory_space<smem>>
    %411 = vector.broadcast %410 : f32 to vector<8x128xf32>
    %412 = arith.mulf %411, %405 : vector<8x128xf32>
    %413 = arith.addf %393, %412 : vector<8x128xf32>
    %c86 = arith.constant 86 : index
    %414 = memref.load %arg1[%c86] : memref<164xf32, #tpu.memory_space<smem>>
    %415 = vector.broadcast %414 : f32 to vector<8x128xf32>
    %416 = arith.mulf %415, %1 : vector<8x128xf32>
    %c102 = arith.constant 102 : index
    %417 = memref.load %arg1[%c102] : memref<164xf32, #tpu.memory_space<smem>>
    %418 = vector.broadcast %417 : f32 to vector<8x128xf32>
    %419 = arith.mulf %418, %3 : vector<8x128xf32>
    %420 = arith.addf %416, %419 : vector<8x128xf32>
    %c118 = arith.constant 118 : index
    %421 = memref.load %arg1[%c118] : memref<164xf32, #tpu.memory_space<smem>>
    %422 = vector.broadcast %421 : f32 to vector<8x128xf32>
    %423 = arith.addf %420, %422 : vector<8x128xf32>
    %cst_29 = arith.constant 0.000000e+00 : f32
    %424 = vector.broadcast %cst_29 : f32 to vector<8x128xf32>
    %425 = arith.maximumf %423, %424 : vector<8x128xf32>
    %c138 = arith.constant 138 : index
    %426 = memref.load %arg1[%c138] : memref<164xf32, #tpu.memory_space<smem>>
    %427 = vector.broadcast %426 : f32 to vector<8x128xf32>
    %428 = arith.mulf %427, %425 : vector<8x128xf32>
    %429 = arith.addf %409, %428 : vector<8x128xf32>
    %c139 = arith.constant 139 : index
    %430 = memref.load %arg1[%c139] : memref<164xf32, #tpu.memory_space<smem>>
    %431 = vector.broadcast %430 : f32 to vector<8x128xf32>
    %432 = arith.mulf %431, %425 : vector<8x128xf32>
    %433 = arith.addf %413, %432 : vector<8x128xf32>
    %c87 = arith.constant 87 : index
    %434 = memref.load %arg1[%c87] : memref<164xf32, #tpu.memory_space<smem>>
    %435 = vector.broadcast %434 : f32 to vector<8x128xf32>
    %436 = arith.mulf %435, %1 : vector<8x128xf32>
    %c103 = arith.constant 103 : index
    %437 = memref.load %arg1[%c103] : memref<164xf32, #tpu.memory_space<smem>>
    %438 = vector.broadcast %437 : f32 to vector<8x128xf32>
    %439 = arith.mulf %438, %3 : vector<8x128xf32>
    %440 = arith.addf %436, %439 : vector<8x128xf32>
    %c119 = arith.constant 119 : index
    %441 = memref.load %arg1[%c119] : memref<164xf32, #tpu.memory_space<smem>>
    %442 = vector.broadcast %441 : f32 to vector<8x128xf32>
    %443 = arith.addf %440, %442 : vector<8x128xf32>
    %cst_30 = arith.constant 0.000000e+00 : f32
    %444 = vector.broadcast %cst_30 : f32 to vector<8x128xf32>
    %445 = arith.maximumf %443, %444 : vector<8x128xf32>
    %c140 = arith.constant 140 : index
    %446 = memref.load %arg1[%c140] : memref<164xf32, #tpu.memory_space<smem>>
    %447 = vector.broadcast %446 : f32 to vector<8x128xf32>
    %448 = arith.mulf %447, %445 : vector<8x128xf32>
    %449 = arith.addf %429, %448 : vector<8x128xf32>
    %c141 = arith.constant 141 : index
    %450 = memref.load %arg1[%c141] : memref<164xf32, #tpu.memory_space<smem>>
    %451 = vector.broadcast %450 : f32 to vector<8x128xf32>
    %452 = arith.mulf %451, %445 : vector<8x128xf32>
    %453 = arith.addf %433, %452 : vector<8x128xf32>
    %c88 = arith.constant 88 : index
    %454 = memref.load %arg1[%c88] : memref<164xf32, #tpu.memory_space<smem>>
    %455 = vector.broadcast %454 : f32 to vector<8x128xf32>
    %456 = arith.mulf %455, %1 : vector<8x128xf32>
    %c104 = arith.constant 104 : index
    %457 = memref.load %arg1[%c104] : memref<164xf32, #tpu.memory_space<smem>>
    %458 = vector.broadcast %457 : f32 to vector<8x128xf32>
    %459 = arith.mulf %458, %3 : vector<8x128xf32>
    %460 = arith.addf %456, %459 : vector<8x128xf32>
    %c120 = arith.constant 120 : index
    %461 = memref.load %arg1[%c120] : memref<164xf32, #tpu.memory_space<smem>>
    %462 = vector.broadcast %461 : f32 to vector<8x128xf32>
    %463 = arith.addf %460, %462 : vector<8x128xf32>
    %cst_31 = arith.constant 0.000000e+00 : f32
    %464 = vector.broadcast %cst_31 : f32 to vector<8x128xf32>
    %465 = arith.maximumf %463, %464 : vector<8x128xf32>
    %c142 = arith.constant 142 : index
    %466 = memref.load %arg1[%c142] : memref<164xf32, #tpu.memory_space<smem>>
    %467 = vector.broadcast %466 : f32 to vector<8x128xf32>
    %468 = arith.mulf %467, %465 : vector<8x128xf32>
    %469 = arith.addf %449, %468 : vector<8x128xf32>
    %c143 = arith.constant 143 : index
    %470 = memref.load %arg1[%c143] : memref<164xf32, #tpu.memory_space<smem>>
    %471 = vector.broadcast %470 : f32 to vector<8x128xf32>
    %472 = arith.mulf %471, %465 : vector<8x128xf32>
    %473 = arith.addf %453, %472 : vector<8x128xf32>
    %c89 = arith.constant 89 : index
    %474 = memref.load %arg1[%c89] : memref<164xf32, #tpu.memory_space<smem>>
    %475 = vector.broadcast %474 : f32 to vector<8x128xf32>
    %476 = arith.mulf %475, %1 : vector<8x128xf32>
    %c105 = arith.constant 105 : index
    %477 = memref.load %arg1[%c105] : memref<164xf32, #tpu.memory_space<smem>>
    %478 = vector.broadcast %477 : f32 to vector<8x128xf32>
    %479 = arith.mulf %478, %3 : vector<8x128xf32>
    %480 = arith.addf %476, %479 : vector<8x128xf32>
    %c121 = arith.constant 121 : index
    %481 = memref.load %arg1[%c121] : memref<164xf32, #tpu.memory_space<smem>>
    %482 = vector.broadcast %481 : f32 to vector<8x128xf32>
    %483 = arith.addf %480, %482 : vector<8x128xf32>
    %cst_32 = arith.constant 0.000000e+00 : f32
    %484 = vector.broadcast %cst_32 : f32 to vector<8x128xf32>
    %485 = arith.maximumf %483, %484 : vector<8x128xf32>
    %c144 = arith.constant 144 : index
    %486 = memref.load %arg1[%c144] : memref<164xf32, #tpu.memory_space<smem>>
    %487 = vector.broadcast %486 : f32 to vector<8x128xf32>
    %488 = arith.mulf %487, %485 : vector<8x128xf32>
    %489 = arith.addf %469, %488 : vector<8x128xf32>
    %c145 = arith.constant 145 : index
    %490 = memref.load %arg1[%c145] : memref<164xf32, #tpu.memory_space<smem>>
    %491 = vector.broadcast %490 : f32 to vector<8x128xf32>
    %492 = arith.mulf %491, %485 : vector<8x128xf32>
    %493 = arith.addf %473, %492 : vector<8x128xf32>
    %c90 = arith.constant 90 : index
    %494 = memref.load %arg1[%c90] : memref<164xf32, #tpu.memory_space<smem>>
    %495 = vector.broadcast %494 : f32 to vector<8x128xf32>
    %496 = arith.mulf %495, %1 : vector<8x128xf32>
    %c106 = arith.constant 106 : index
    %497 = memref.load %arg1[%c106] : memref<164xf32, #tpu.memory_space<smem>>
    %498 = vector.broadcast %497 : f32 to vector<8x128xf32>
    %499 = arith.mulf %498, %3 : vector<8x128xf32>
    %500 = arith.addf %496, %499 : vector<8x128xf32>
    %c122 = arith.constant 122 : index
    %501 = memref.load %arg1[%c122] : memref<164xf32, #tpu.memory_space<smem>>
    %502 = vector.broadcast %501 : f32 to vector<8x128xf32>
    %503 = arith.addf %500, %502 : vector<8x128xf32>
    %cst_33 = arith.constant 0.000000e+00 : f32
    %504 = vector.broadcast %cst_33 : f32 to vector<8x128xf32>
    %505 = arith.maximumf %503, %504 : vector<8x128xf32>
    %c146 = arith.constant 146 : index
    %506 = memref.load %arg1[%c146] : memref<164xf32, #tpu.memory_space<smem>>
    %507 = vector.broadcast %506 : f32 to vector<8x128xf32>
    %508 = arith.mulf %507, %505 : vector<8x128xf32>
    %509 = arith.addf %489, %508 : vector<8x128xf32>
    %c147 = arith.constant 147 : index
    %510 = memref.load %arg1[%c147] : memref<164xf32, #tpu.memory_space<smem>>
    %511 = vector.broadcast %510 : f32 to vector<8x128xf32>
    %512 = arith.mulf %511, %505 : vector<8x128xf32>
    %513 = arith.addf %493, %512 : vector<8x128xf32>
    %c91 = arith.constant 91 : index
    %514 = memref.load %arg1[%c91] : memref<164xf32, #tpu.memory_space<smem>>
    %515 = vector.broadcast %514 : f32 to vector<8x128xf32>
    %516 = arith.mulf %515, %1 : vector<8x128xf32>
    %c107 = arith.constant 107 : index
    %517 = memref.load %arg1[%c107] : memref<164xf32, #tpu.memory_space<smem>>
    %518 = vector.broadcast %517 : f32 to vector<8x128xf32>
    %519 = arith.mulf %518, %3 : vector<8x128xf32>
    %520 = arith.addf %516, %519 : vector<8x128xf32>
    %c123 = arith.constant 123 : index
    %521 = memref.load %arg1[%c123] : memref<164xf32, #tpu.memory_space<smem>>
    %522 = vector.broadcast %521 : f32 to vector<8x128xf32>
    %523 = arith.addf %520, %522 : vector<8x128xf32>
    %cst_34 = arith.constant 0.000000e+00 : f32
    %524 = vector.broadcast %cst_34 : f32 to vector<8x128xf32>
    %525 = arith.maximumf %523, %524 : vector<8x128xf32>
    %c148 = arith.constant 148 : index
    %526 = memref.load %arg1[%c148] : memref<164xf32, #tpu.memory_space<smem>>
    %527 = vector.broadcast %526 : f32 to vector<8x128xf32>
    %528 = arith.mulf %527, %525 : vector<8x128xf32>
    %529 = arith.addf %509, %528 : vector<8x128xf32>
    %c149 = arith.constant 149 : index
    %530 = memref.load %arg1[%c149] : memref<164xf32, #tpu.memory_space<smem>>
    %531 = vector.broadcast %530 : f32 to vector<8x128xf32>
    %532 = arith.mulf %531, %525 : vector<8x128xf32>
    %533 = arith.addf %513, %532 : vector<8x128xf32>
    %c92 = arith.constant 92 : index
    %534 = memref.load %arg1[%c92] : memref<164xf32, #tpu.memory_space<smem>>
    %535 = vector.broadcast %534 : f32 to vector<8x128xf32>
    %536 = arith.mulf %535, %1 : vector<8x128xf32>
    %c108 = arith.constant 108 : index
    %537 = memref.load %arg1[%c108] : memref<164xf32, #tpu.memory_space<smem>>
    %538 = vector.broadcast %537 : f32 to vector<8x128xf32>
    %539 = arith.mulf %538, %3 : vector<8x128xf32>
    %540 = arith.addf %536, %539 : vector<8x128xf32>
    %c124 = arith.constant 124 : index
    %541 = memref.load %arg1[%c124] : memref<164xf32, #tpu.memory_space<smem>>
    %542 = vector.broadcast %541 : f32 to vector<8x128xf32>
    %543 = arith.addf %540, %542 : vector<8x128xf32>
    %cst_35 = arith.constant 0.000000e+00 : f32
    %544 = vector.broadcast %cst_35 : f32 to vector<8x128xf32>
    %545 = arith.maximumf %543, %544 : vector<8x128xf32>
    %c150 = arith.constant 150 : index
    %546 = memref.load %arg1[%c150] : memref<164xf32, #tpu.memory_space<smem>>
    %547 = vector.broadcast %546 : f32 to vector<8x128xf32>
    %548 = arith.mulf %547, %545 : vector<8x128xf32>
    %549 = arith.addf %529, %548 : vector<8x128xf32>
    %c151 = arith.constant 151 : index
    %550 = memref.load %arg1[%c151] : memref<164xf32, #tpu.memory_space<smem>>
    %551 = vector.broadcast %550 : f32 to vector<8x128xf32>
    %552 = arith.mulf %551, %545 : vector<8x128xf32>
    %553 = arith.addf %533, %552 : vector<8x128xf32>
    %c93 = arith.constant 93 : index
    %554 = memref.load %arg1[%c93] : memref<164xf32, #tpu.memory_space<smem>>
    %555 = vector.broadcast %554 : f32 to vector<8x128xf32>
    %556 = arith.mulf %555, %1 : vector<8x128xf32>
    %c109 = arith.constant 109 : index
    %557 = memref.load %arg1[%c109] : memref<164xf32, #tpu.memory_space<smem>>
    %558 = vector.broadcast %557 : f32 to vector<8x128xf32>
    %559 = arith.mulf %558, %3 : vector<8x128xf32>
    %560 = arith.addf %556, %559 : vector<8x128xf32>
    %c125 = arith.constant 125 : index
    %561 = memref.load %arg1[%c125] : memref<164xf32, #tpu.memory_space<smem>>
    %562 = vector.broadcast %561 : f32 to vector<8x128xf32>
    %563 = arith.addf %560, %562 : vector<8x128xf32>
    %cst_36 = arith.constant 0.000000e+00 : f32
    %564 = vector.broadcast %cst_36 : f32 to vector<8x128xf32>
    %565 = arith.maximumf %563, %564 : vector<8x128xf32>
    %c152 = arith.constant 152 : index
    %566 = memref.load %arg1[%c152] : memref<164xf32, #tpu.memory_space<smem>>
    %567 = vector.broadcast %566 : f32 to vector<8x128xf32>
    %568 = arith.mulf %567, %565 : vector<8x128xf32>
    %569 = arith.addf %549, %568 : vector<8x128xf32>
    %c153 = arith.constant 153 : index
    %570 = memref.load %arg1[%c153] : memref<164xf32, #tpu.memory_space<smem>>
    %571 = vector.broadcast %570 : f32 to vector<8x128xf32>
    %572 = arith.mulf %571, %565 : vector<8x128xf32>
    %573 = arith.addf %553, %572 : vector<8x128xf32>
    %c94 = arith.constant 94 : index
    %574 = memref.load %arg1[%c94] : memref<164xf32, #tpu.memory_space<smem>>
    %575 = vector.broadcast %574 : f32 to vector<8x128xf32>
    %576 = arith.mulf %575, %1 : vector<8x128xf32>
    %c110 = arith.constant 110 : index
    %577 = memref.load %arg1[%c110] : memref<164xf32, #tpu.memory_space<smem>>
    %578 = vector.broadcast %577 : f32 to vector<8x128xf32>
    %579 = arith.mulf %578, %3 : vector<8x128xf32>
    %580 = arith.addf %576, %579 : vector<8x128xf32>
    %c126 = arith.constant 126 : index
    %581 = memref.load %arg1[%c126] : memref<164xf32, #tpu.memory_space<smem>>
    %582 = vector.broadcast %581 : f32 to vector<8x128xf32>
    %583 = arith.addf %580, %582 : vector<8x128xf32>
    %cst_37 = arith.constant 0.000000e+00 : f32
    %584 = vector.broadcast %cst_37 : f32 to vector<8x128xf32>
    %585 = arith.maximumf %583, %584 : vector<8x128xf32>
    %c154 = arith.constant 154 : index
    %586 = memref.load %arg1[%c154] : memref<164xf32, #tpu.memory_space<smem>>
    %587 = vector.broadcast %586 : f32 to vector<8x128xf32>
    %588 = arith.mulf %587, %585 : vector<8x128xf32>
    %589 = arith.addf %569, %588 : vector<8x128xf32>
    %c155 = arith.constant 155 : index
    %590 = memref.load %arg1[%c155] : memref<164xf32, #tpu.memory_space<smem>>
    %591 = vector.broadcast %590 : f32 to vector<8x128xf32>
    %592 = arith.mulf %591, %585 : vector<8x128xf32>
    %593 = arith.addf %573, %592 : vector<8x128xf32>
    %c95 = arith.constant 95 : index
    %594 = memref.load %arg1[%c95] : memref<164xf32, #tpu.memory_space<smem>>
    %595 = vector.broadcast %594 : f32 to vector<8x128xf32>
    %596 = arith.mulf %595, %1 : vector<8x128xf32>
    %c111 = arith.constant 111 : index
    %597 = memref.load %arg1[%c111] : memref<164xf32, #tpu.memory_space<smem>>
    %598 = vector.broadcast %597 : f32 to vector<8x128xf32>
    %599 = arith.mulf %598, %3 : vector<8x128xf32>
    %600 = arith.addf %596, %599 : vector<8x128xf32>
    %c127 = arith.constant 127 : index
    %601 = memref.load %arg1[%c127] : memref<164xf32, #tpu.memory_space<smem>>
    %602 = vector.broadcast %601 : f32 to vector<8x128xf32>
    %603 = arith.addf %600, %602 : vector<8x128xf32>
    %cst_38 = arith.constant 0.000000e+00 : f32
    %604 = vector.broadcast %cst_38 : f32 to vector<8x128xf32>
    %605 = arith.maximumf %603, %604 : vector<8x128xf32>
    %c156 = arith.constant 156 : index
    %606 = memref.load %arg1[%c156] : memref<164xf32, #tpu.memory_space<smem>>
    %607 = vector.broadcast %606 : f32 to vector<8x128xf32>
    %608 = arith.mulf %607, %605 : vector<8x128xf32>
    %609 = arith.addf %589, %608 : vector<8x128xf32>
    %c157 = arith.constant 157 : index
    %610 = memref.load %arg1[%c157] : memref<164xf32, #tpu.memory_space<smem>>
    %611 = vector.broadcast %610 : f32 to vector<8x128xf32>
    %612 = arith.mulf %611, %605 : vector<8x128xf32>
    %613 = arith.addf %593, %612 : vector<8x128xf32>
    %c96 = arith.constant 96 : index
    %614 = memref.load %arg1[%c96] : memref<164xf32, #tpu.memory_space<smem>>
    %615 = vector.broadcast %614 : f32 to vector<8x128xf32>
    %616 = arith.mulf %615, %1 : vector<8x128xf32>
    %c112 = arith.constant 112 : index
    %617 = memref.load %arg1[%c112] : memref<164xf32, #tpu.memory_space<smem>>
    %618 = vector.broadcast %617 : f32 to vector<8x128xf32>
    %619 = arith.mulf %618, %3 : vector<8x128xf32>
    %620 = arith.addf %616, %619 : vector<8x128xf32>
    %c128 = arith.constant 128 : index
    %621 = memref.load %arg1[%c128] : memref<164xf32, #tpu.memory_space<smem>>
    %622 = vector.broadcast %621 : f32 to vector<8x128xf32>
    %623 = arith.addf %620, %622 : vector<8x128xf32>
    %cst_39 = arith.constant 0.000000e+00 : f32
    %624 = vector.broadcast %cst_39 : f32 to vector<8x128xf32>
    %625 = arith.maximumf %623, %624 : vector<8x128xf32>
    %c158 = arith.constant 158 : index
    %626 = memref.load %arg1[%c158] : memref<164xf32, #tpu.memory_space<smem>>
    %627 = vector.broadcast %626 : f32 to vector<8x128xf32>
    %628 = arith.mulf %627, %625 : vector<8x128xf32>
    %629 = arith.addf %609, %628 : vector<8x128xf32>
    %c159 = arith.constant 159 : index
    %630 = memref.load %arg1[%c159] : memref<164xf32, #tpu.memory_space<smem>>
    %631 = vector.broadcast %630 : f32 to vector<8x128xf32>
    %632 = arith.mulf %631, %625 : vector<8x128xf32>
    %633 = arith.addf %613, %632 : vector<8x128xf32>
    %c97 = arith.constant 97 : index
    %634 = memref.load %arg1[%c97] : memref<164xf32, #tpu.memory_space<smem>>
    %635 = vector.broadcast %634 : f32 to vector<8x128xf32>
    %636 = arith.mulf %635, %1 : vector<8x128xf32>
    %c113 = arith.constant 113 : index
    %637 = memref.load %arg1[%c113] : memref<164xf32, #tpu.memory_space<smem>>
    %638 = vector.broadcast %637 : f32 to vector<8x128xf32>
    %639 = arith.mulf %638, %3 : vector<8x128xf32>
    %640 = arith.addf %636, %639 : vector<8x128xf32>
    %c129 = arith.constant 129 : index
    %641 = memref.load %arg1[%c129] : memref<164xf32, #tpu.memory_space<smem>>
    %642 = vector.broadcast %641 : f32 to vector<8x128xf32>
    %643 = arith.addf %640, %642 : vector<8x128xf32>
    %cst_40 = arith.constant 0.000000e+00 : f32
    %644 = vector.broadcast %cst_40 : f32 to vector<8x128xf32>
    %645 = arith.maximumf %643, %644 : vector<8x128xf32>
    %c160 = arith.constant 160 : index
    %646 = memref.load %arg1[%c160] : memref<164xf32, #tpu.memory_space<smem>>
    %647 = vector.broadcast %646 : f32 to vector<8x128xf32>
    %648 = arith.mulf %647, %645 : vector<8x128xf32>
    %649 = arith.addf %629, %648 : vector<8x128xf32>
    %c161 = arith.constant 161 : index
    %650 = memref.load %arg1[%c161] : memref<164xf32, #tpu.memory_space<smem>>
    %651 = vector.broadcast %650 : f32 to vector<8x128xf32>
    %652 = arith.mulf %651, %645 : vector<8x128xf32>
    %653 = arith.addf %633, %652 : vector<8x128xf32>
    %c162 = arith.constant 162 : index
    %654 = memref.load %arg1[%c162] : memref<164xf32, #tpu.memory_space<smem>>
    %655 = vector.broadcast %654 : f32 to vector<8x128xf32>
    %656 = arith.addf %649, %655 : vector<8x128xf32>
    %c163 = arith.constant 163 : index
    %657 = memref.load %arg1[%c163] : memref<164xf32, #tpu.memory_space<smem>>
    %658 = vector.broadcast %657 : f32 to vector<8x128xf32>
    %659 = arith.addf %653, %658 : vector<8x128xf32>
    %c0_41 = arith.constant 0 : index
    %c0_42 = arith.constant 0 : index
    %c0_43 = arith.constant 0 : index
    %660 = vector.load %arg3[%c0_41, %c0_42, %c0_43] : memref<4x8x128xf32, #tpu.memory_space<vmem>>, vector<1x8x128xf32>
    %661 = vector.shape_cast %660 : vector<1x8x128xf32> to vector<8x128xf32>
    %662 = vector.shape_cast %328 : vector<8x128xf32> to vector<1x8x128xf32>
    tpu.vector_store %arg3[%c0_41, %c0_42, %c0_43], %662 {strides = array<i32>} : memref<4x8x128xf32, #tpu.memory_space<vmem>>, vector<1x8x128xf32>,
    %c1_44 = arith.constant 1 : index
    %c0_45 = arith.constant 0 : index
    %c0_46 = arith.constant 0 : index
    %663 = vector.load %arg3[%c1_44, %c0_45, %c0_46] : memref<4x8x128xf32, #tpu.memory_space<vmem>>, vector<1x8x128xf32>
    %664 = vector.shape_cast %663 : vector<1x8x128xf32> to vector<8x128xf32>
    %665 = vector.shape_cast %331 : vector<8x128xf32> to vector<1x8x128xf32>
    tpu.vector_store %arg3[%c1_44, %c0_45, %c0_46], %665 {strides = array<i32>} : memref<4x8x128xf32, #tpu.memory_space<vmem>>, vector<1x8x128xf32>,
    %cst_47 = arith.constant 0.000000e+00 : f32
    %666 = vector.broadcast %cst_47 : f32 to vector<8x128xf32>
    %667 = arith.maximumf %656, %666 : vector<8x128xf32>
    %668 = vector.broadcast %cst_47 : f32 to vector<8x128xf32>
    %669 = arith.subf %656, %668 : vector<8x128xf32>
    %670 = arith.cmpf one, %669, %669 : vector<8x128xf32>
    %671 = vector.broadcast %cst_47 : f32 to vector<8x128xf32>
    %672 = arith.addf %656, %671 : vector<8x128xf32>
    %673 = math.absf %669 : vector<8x128xf32>
    %cst_48 = arith.constant 0.000000e+00 : f32
    %674 = vector.broadcast %cst_48 : f32 to vector<8x128xf32>
    %675 = arith.subf %674, %673 : vector<8x128xf32>
    %676 = math.exp %675 : vector<8x128xf32>
    %677 = math.log1p %676 : vector<8x128xf32>
    %678 = arith.addf %667, %677 : vector<8x128xf32>
    %679 = arith.select %670, %672, %678 : vector<8x128xi1>, vector<8x128xf32>
    %c2_49 = arith.constant 2 : index
    %c0_50 = arith.constant 0 : index
    %c0_51 = arith.constant 0 : index
    %680 = vector.load %arg3[%c2_49, %c0_50, %c0_51] : memref<4x8x128xf32, #tpu.memory_space<vmem>>, vector<1x8x128xf32>
    %681 = vector.shape_cast %680 : vector<1x8x128xf32> to vector<8x128xf32>
    %682 = vector.shape_cast %679 : vector<8x128xf32> to vector<1x8x128xf32>
    tpu.vector_store %arg3[%c2_49, %c0_50, %c0_51], %682 {strides = array<i32>} : memref<4x8x128xf32, #tpu.memory_space<vmem>>, vector<1x8x128xf32>,
    %cst_52 = arith.constant 0.000000e+00 : f32
    %683 = vector.broadcast %cst_52 : f32 to vector<8x128xf32>
    %684 = arith.maximumf %659, %683 : vector<8x128xf32>
    %685 = vector.broadcast %cst_52 : f32 to vector<8x128xf32>
    %686 = arith.subf %659, %685 : vector<8x128xf32>
    %687 = arith.cmpf one, %686, %686 : vector<8x128xf32>
    %688 = vector.broadcast %cst_52 : f32 to vector<8x128xf32>
    %689 = arith.addf %659, %688 : vector<8x128xf32>
    %690 = math.absf %686 : vector<8x128xf32>
    %cst_53 = arith.constant 0.000000e+00 : f32
    %691 = vector.broadcast %cst_53 : f32 to vector<8x128xf32>
    %692 = arith.subf %691, %690 : vector<8x128xf32>
    %693 = math.exp %692 : vector<8x128xf32>
    %694 = math.log1p %693 : vector<8x128xf32>
    %695 = arith.addf %684, %694 : vector<8x128xf32>
    %696 = arith.select %687, %689, %695 : vector<8x128xi1>, vector<8x128xf32>
    %c3_54 = arith.constant 3 : index
    %c0_55 = arith.constant 0 : index
    %c0_56 = arith.constant 0 : index
    %697 = vector.load %arg3[%c3_54, %c0_55, %c0_56] : memref<4x8x128xf32, #tpu.memory_space<vmem>>, vector<1x8x128xf32>
    %698 = vector.shape_cast %697 : vector<1x8x128xf32> to vector<8x128xf32>
    %699 = vector.shape_cast %696 : vector<8x128xf32> to vector<1x8x128xf32>
    tpu.vector_store %arg3[%c3_54, %c0_55, %c0_56], %699 {strides = array<i32>} : memref<4x8x128xf32, #tpu.memory_space<vmem>>, vector<1x8x128xf32>,
    return
  }
  func.func @transform_0(%arg0: i32) -> i32 {
    %c0_i32 = arith.constant 0 : i32
    %c0_i32_0 = arith.constant 0 : i32
    return %c0_i32 : i32
  }
  func.func @transform_1(%arg0: i32) -> (i32, i32, i32) {
    %c0_i32 = arith.constant 0 : i32
    %c0_i32_0 = arith.constant 0 : i32
    %c0_i32_1 = arith.constant 0 : i32
    return %c0_i32, %arg0, %c0_i32_0 : i32, i32, i32
  }
  func.func @transform_2(%arg0: i32) -> (i32, i32, i32) {
    %c0_i32 = arith.constant 0 : i32
    %c0_i32_0 = arith.constant 0 : i32
    %c0_i32_1 = arith.constant 0 : i32
    return %c0_i32, %arg0, %c0_i32_0 : i32, i32, i32
  }
}

</mosaic_0001>

<bundles_post_ra>
// kernel: tpu_custom_call.1
= control target key start
LH: loop header
LB: loop body
LE: loop exit
PB: predicated region body
PF: predicated region fallthrough
CT: control target
= control target key end

     0   :  { %7 = vsyncpa [#allocation5], 0  ;;  %s1555_s0 = inlined_call_operand.hbm [shape: f32[164], index: 0, kind: input, shape index: {}]   ;;  %s1556_s1 = inlined_call_operand.hbm [shape: f32[2,8,128], index: 1, kind: input, shape index: {}]   ;;  %s1557_s2 = inlined_call_operand.hbm [shape: f32[4,8,128], index: 2, kind: output, shape index: {}]  }
   0x1   :  { %8 = vsyncpa [#allocation3], 0 }
   0x2   :  { %9 = vsyncpa [#allocation4], 0  ;;  %s899_s11 = scalar_lea.hbm %s1555_s0, 32 }
   0x3   :  { %p900_p0 = scmp.ne.s32.totalorder %s1555_s0, %s899_s11  ;;  %p903_p1 = scmp.lt.u32.totalorder %s899_s11, %s1555_s0 }
   0x5   :  { %p905_p2 = pnand %p903_p1, %p900_p0 }
   0x7   :  { %908 = shalt.err (!%p905_p2)
}
   0x8   :  { %s959_s16 = smov [#allocation2]   ;;  %s960_s19 = smov [#allocation6]  }
   0x9   :  { %17 = dma.hbm_to_smem %s1555_s0, 32, %s959_s16, [#allocation5]  }
   0xa   :  { %s23_s20 = sshll.u32 %s960_s19, 4  ;;  %s909_s23 = scalar_lea.hbm %s1556_s1, 256  ;;  %s24_s20 = int_to_ptr.vmem [resolvable:$true] %s23_s20 }
   0xb   :  { %p910_p3 = scmp.ne.s32.totalorder %s1556_s1, %s909_s23  ;;  %p913_p4 = scmp.lt.u32.totalorder %s909_s23, %s1556_s1 }
   0xd   :  { %p915_p5 = pnand %p913_p4, %p910_p3 }
   0xf   :  { %918 = shalt.err (!%p915_p5)
}
  0x10   :  { %s919_s28 = scalar_lea.vmem %s24_s20, 256  ;;  %p924_p7 = scmp.lt.s32.totalorder %s24_s20, %s24_s20 }
  0x11   :  { %p920_p6 = scmp.ne.s32.totalorder %s24_s20, %s919_s28  ;;  %p925_p8 = scmp.lt.s32.totalorder %s919_s28, %s919_s28 }
  0x13   :  { %p926_p9 = por %p925_p8, %p924_p7 }
  0x15   :  { %p927_p10 = pnand %p926_p9, %p920_p6 }
  0x17   :  { %930 = shalt.err (!%p927_p10)
}
  0x18   :  { %s961_s0 = smov 128   ;;  %s962_s29 = smov 8  }
  0x19   :  { %29 = dma.hbm_to_vmem [thread:$0]  %s1556_s1, 256, %s24_s20, [#allocation3], %s961_s0, %s961_s0, %s962_s29  }
  0x1a   :  { %953 = dma.done.wait [#allocation5], 32  }
  0x1b   :  { %954 = vsyncadd [#allocation5], 4294967264 }
  0x1c   :  { %955 = dma.done.wait [#allocation3], 256  }
  0x1d   :  { %956 = vsyncadd [#allocation3], 4294967040 }
  0x1e   :  { %36 = sfence }
  0x1f   :  { %s40_s4 = sld [smem:[#allocation2]]  ;;  %s1010_s8 = sld [smem:[#allocation2 + $0x31]]  ;;  %v1022_v0 = vld [vmem:[#allocation6] sm:$0xff]  ;;  %v1024_v1 = vld [vmem:[#allocation6 + $0x8] sm:$0xff] }
  0x20   :  { %s721_s5 = sld [smem:[#allocation2 + $0x10]]  ;;  %s725_s9 = sld [smem:[#allocation2 + $0x1]] }
  0x21   :  { %s1006_s6 = sld [smem:[#allocation2 + $0x20]]  ;;  %s726_s10 = sld [smem:[#allocation2 + $0x11]] }
  0x22   :  { %s1008_s7 = sld [smem:[#allocation2 + $0x30]]  ;;  %s1012_s11 = sld [smem:[#allocation2 + $0x21]] }
  0x23   :  { %s1014_s12 = sld [smem:[#allocation2 + $0x32]]  ;;  %s1016_s1 = sld [smem:[#allocation2 + $0x33]] }
  0x24   :  { %s1018_s13 = sld [smem:[#allocation2 + $0x2]]  ;;  %s1028_s16 = sld [smem:[#allocation2 + $0x34]] }
  0x25   :  { %s1020_s14 = sld [smem:[#allocation2 + $0x12]]  ;;  %v41_v2 = vstv %s40_s4  ;;  %s1032_s17 = sld [smem:[#allocation2 + $0x35]]  ;;  %v56_v12 = vstv %s1010_s8 }
  0x26   :  { %v44_v3 = vstv %s721_s5  ;;  %s1026_s15 = sld [smem:[#allocation2 + $0x22]]  ;;  %v42_v4 = vmul.f32 %v41_v2, %v1022_v0  ;;  %s1034_s18 = sld [smem:[#allocation2 + $0x3]]  ;;  %v60_v7 = vstv %s725_s9 }
  0x27   :  { %v45_v5 = vmul.f32 %v44_v3, %v1024_v1  ;;  %v48_v6 = vstv %s1006_s6  ;;  %s1037_s19 = sld [smem:[#allocation2 + $0x13]]  ;;  %v61_v9 = vmul.f32 %v60_v7, %v1022_v0  ;;  %v63_v10 = vstv %s726_s10  ;;  %s1042_s21 = sld [smem:[#allocation2 + $0x36]] }
  0x28   :  { %s1039_s20 = sld [smem:[#allocation2 + $0x23]]  ;;  %v52_v11 = vstv %s1008_s7  ;;  %v64_v13 = vmul.f32 %v63_v10, %v1024_v1  ;;  %s1047_s22 = sld [smem:[#allocation2 + $0x4]]  ;;  %v67_v15 = vstv %s1012_s11 }
  0x29   :  { %v46_v8 = vadd.f32 %v45_v5, %v42_v4  ;;  %s1049_s23 = sld [smem:[#allocation2 + $0x14]]  ;;  %s1054_s24 = sld [smem:[#allocation2 + $0x37]]  ;;  %v71_v19 = vstv %s1014_s12  ;;  %v75_v23 = vstv %s1016_s1 }
  0x2a   :  { %v79_v16 = vstv %s1018_s13  ;;  %s1056_s25 = sld [smem:[#allocation2 + $0x24]]  ;;  %v65_v18 = vadd.f32 %v64_v13, %v61_v9  ;;  %s1064_s26 = sld [smem:[#allocation2 + $0x5]]  ;;  %v90_v31 = vstv %s1028_s16 }
  0x2b   :  { %v49_v14 = vadd.f32 %v48_v6, %v46_v8  ;;  %v82_v17 = vstv %s1020_s14  ;;  %v80_v20 = vmul.f32 %v79_v16, %v1022_v0  ;;  %s1066_s27 = sld [smem:[#allocation2 + $0x15]]  ;;  %v94_v32 = vstv %s1032_s17  ;;  %s1073_s28 = sld [smem:[#allocation2 + $0x38]] }
  0x2c   :  { %v83_v21 = vmul.f32 %v82_v17, %v1024_v1  ;;  %v86_v24 = vstv %s1026_s15  ;;  %v98_v25 = vstv %s1034_s18  ;;  %v68_v26 = vadd.f32 %v67_v15, %v65_v18  ;;  %s1075_s30 = sld [smem:[#allocation2 + $0x25]]  ;;  %s1078_s3 = sld [smem:[#allocation2 + $0x39]] }
  0x2d   :  { %v50_v22 = vmax.f32 %v49_v14, 0.0  ;;  %v99_v28 = vmul.f32 %v98_v25, %v1022_v0  ;;  %v101_v29 = vstv %s1037_s19  ;;  %s1080_s4 = sld [smem:[#allocation2 + $0x6]]  ;;  %v109_v39 = vstv %s1042_s21  ;;  %s1085_s5 = sld [smem:[#allocation2 + $0x3a]] }
  0x2e   :  { %v84_v27 = vadd.f32 %v83_v21, %v80_v20  ;;  %v102_v33 = vmul.f32 %v101_v29, %v1024_v1  ;;  %v69_v35 = vmax.f32 %v68_v26, 0.0  ;;  %v105_v37 = vstv %s1039_s20  ;;  %s1088_s6 = sld [smem:[#allocation2 + $0x3b]]  ;;  %s1090_s7 = sld [smem:[#allocation2 + $0x16]] }
  0x2f   :  { %v53_v30 = vmul.f32 %v52_v11, %v50_v22  ;;  %v57_v34 = vmul.f32 %v56_v12, %v50_v22  ;;  %v117_v40 = vstv %s1047_s22  ;;  %v120_v41 = vstv %s1049_s23  ;;  %s1095_s8 = sld [smem:[#allocation2 + $0x26]]  ;;  %s1097_s9 = sld [smem:[#allocation2 + $0x3c]] }
  0x30   :  { %v87_v36 = vadd.f32 %v86_v24, %v84_v27  ;;  %v103_v38 = vadd.f32 %v102_v33, %v99_v28  ;;  %v72_v42 = vmul.f32 %v71_v19, %v69_v35  ;;  %v76_v43 = vmul.f32 %v75_v23, %v69_v35  ;;  %s1099_s10 = sld [smem:[#allocation2 + $0x7]]  ;;  %s1107_s12 = sld [smem:[#allocation2 + $0x3d]] }
  0x31   :  { %v118_v45 = vmul.f32 %v117_v40, %v1022_v0  ;;  %v113_v47 = vstv %s1054_s24  ;;  %v121_v48 = vmul.f32 %v120_v41, %v1024_v1  ;;  %v124_v49 = vstv %s1056_s25  ;;  %s1101_s11 = sld [smem:[#allocation2 + $0x17]]  ;;  %s1112_s13 = sld [smem:[#allocation2 + $0x8]] }
  0x32   :  { %v88_v44 = vmax.f32 %v87_v36, 0.0  ;;  %v106_v46 = vadd.f32 %v105_v37, %v103_v38  ;;  %v73_v50 = vadd.f32 %v72_v42, %v53_v30  ;;  %v77_v51 = vadd.f32 %v76_v43, %v57_v34  ;;  %s1109_s1 = sld [smem:[#allocation2 + $0x27]]  ;;  %s1114_s14 = sld [smem:[#allocation2 + $0x18]] }
  0x33   :  { %v122_v55 = vadd.f32 %v121_v48, %v118_v45  ;;  %v136_v56 = vstv %s1064_s26  ;;  %v139_v57 = vstv %s1066_s27  ;;  %v143_v3 = vstv %s1075_s30  ;;  %s1119_s15 = sld [smem:[#allocation2 + $0x3e]]  ;;  %s1121_s16 = sld [smem:[#allocation2 + $0x3f]] }
  0x34   :  { %v91_v52 = vmul.f32 %v90_v31, %v88_v44  ;;  %v95_v53 = vmul.f32 %v94_v32, %v88_v44  ;;  %v107_v54 = vmax.f32 %v106_v46, 0.0  ;;  %v137_v60 = vmul.f32 %v136_v56, %v1022_v0  ;;  %s1124_s17 = sld [smem:[#allocation2 + $0x28]]  ;;  %s1129_s18 = sld [smem:[#allocation2 + $0x9]] }
  0x35   :  { %v140_v61 = vmul.f32 %v139_v57, %v1024_v1  ;;  %v125_v2 = vadd.f32 %v124_v49, %v122_v55  ;;  %v128_v4 = vstv %s1073_s28  ;;  %v132_v5 = vstv %s1078_s3  ;;  %s1131_s19 = sld [smem:[#allocation2 + $0x19]]  ;;  %s1138_s20 = sld [smem:[#allocation2 + $0x40]] }
  0x36   :  { %v92_v58 = vadd.f32 %v91_v52, %v73_v50  ;;  %v96_v59 = vadd.f32 %v95_v53, %v77_v51  ;;  %v110_v62 = vmul.f32 %v109_v39, %v107_v54  ;;  %v114_v63 = vmul.f32 %v113_v47, %v107_v54  ;;  %s1140_s21 = sld [smem:[#allocation2 + $0x41]]  ;;  %s1147_s23 = sld [smem:[#allocation2 + $0xa]] }
  0x37   :  { %v141_v6 = vadd.f32 %v140_v61, %v137_v60  ;;  %v155_v7 = vstv %s1080_s4  ;;  %v126_v10 = vmax.f32 %v125_v2, 0.0  ;;  %v147_v13 = vstv %s1085_s5  ;;  %s1143_s22 = sld [smem:[#allocation2 + $0x29]]  ;;  %s1152_s24 = sld [smem:[#allocation2 + $0x42]] }
  0x38   :  { %v111_v8 = vadd.f32 %v110_v62, %v92_v58  ;;  %v115_v9 = vadd.f32 %v114_v63, %v96_v59  ;;  %v156_v11 = vmul.f32 %v155_v7, %v1022_v0  ;;  %v151_v14 = vstv %s1088_s6  ;;  %s1154_s25 = sld [smem:[#allocation2 + $0x1a]]  ;;  %s1160_s26 = sld [smem:[#allocation2 + $0x43]] }
  0x39   :  { %v144_v12 = vadd.f32 %v143_v3, %v141_v6  ;;  %v158_v15 = vstv %s1090_s7  ;;  %v129_v16 = vmul.f32 %v128_v4, %v126_v10  ;;  %v133_v17 = vmul.f32 %v132_v5, %v126_v10  ;;  %s1162_s27 = sld [smem:[#allocation2 + $0x2a]]  ;;  %s1167_s28 = sld [smem:[#allocation2 + $0xb]] }
  0x3a   :  { %v159_v18 = vmul.f32 %v158_v15, %v1024_v1  ;;  %v162_v19 = vstv %s1095_s8  ;;  %v166_v21 = vstv %s1097_s9  ;;  %v174_v22 = vstv %s1099_s10  ;;  %s1169_s30 = sld [smem:[#allocation2 + $0x1b]]  ;;  %s1175_s3 = sld [smem:[#allocation2 + $0x44]] }
  0x3b   :  { %v145_v20 = vmax.f32 %v144_v12, 0.0  ;;  %v177_v23 = vstv %s1101_s11  ;;  %v130_v24 = vadd.f32 %v129_v16, %v111_v8  ;;  %v134_v25 = vadd.f32 %v133_v17, %v115_v9  ;;  %s1177_s4 = sld [smem:[#allocation2 + $0x2b]]  ;;  %s1180_s5 = sld [smem:[#allocation2 + $0x45]] }
  0x3c   :  { %v160_v26 = vadd.f32 %v159_v18, %v156_v11  ;;  %v175_v27 = vmul.f32 %v174_v22, %v1022_v0  ;;  %v170_v30 = vstv %s1107_s12  ;;  %v178_v31 = vmul.f32 %v177_v23, %v1024_v1  ;;  %s1182_s6 = sld [smem:[#allocation2 + $0xc]]  ;;  %s1185_s7 = sld [smem:[#allocation2 + $0x46]] }
  0x3d   :  { %v148_v28 = vmul.f32 %v147_v13, %v145_v20  ;;  %v152_v29 = vmul.f32 %v151_v14, %v145_v20  ;;  %v181_v33 = vstv %s1109_s1  ;;  %v193_v34 = vstv %s1112_s13  ;;  %s1190_s8 = sld [smem:[#allocation2 + $0x47]]  ;;  %s1192_s9 = sld [smem:[#allocation2 + $0x1c]] }
  0x3e   :  { %v163_v32 = vadd.f32 %v162_v19, %v160_v26  ;;  %v196_v35 = vstv %s1114_s14  ;;  %v179_v36 = vadd.f32 %v178_v31, %v175_v27  ;;  %v185_v37 = vstv %s1119_s15  ;;  %s1195_s10 = sld [smem:[#allocation2 + $0x2c]]  ;;  %s1197_s11 = sld [smem:[#allocation2 + $0x48]] }
  0x3f   :  { %v189_v38 = vstv %s1121_s16  ;;  %v194_v39 = vmul.f32 %v193_v34, %v1022_v0  ;;  %v149_v40 = vadd.f32 %v148_v28, %v130_v24  ;;  %v153_v41 = vadd.f32 %v152_v29, %v134_v25  ;;  %s1201_s12 = sld [smem:[#allocation2 + $0xd]]  ;;  %s1209_s13 = sld [smem:[#allocation2 + $0x49]] }
  0x40   :  { %v164_v42 = vmax.f32 %v163_v32, 0.0  ;;  %v197_v43 = vmul.f32 %v196_v35, %v1024_v1  ;;  %v182_v44 = vadd.f32 %v181_v33, %v179_v36  ;;  %v200_v45 = vstv %s1124_s17  ;;  %s1203_s1 = sld [smem:[#allocation2 + $0x1d]]  ;;  %s1214_s15 = sld [smem:[#allocation2 + $0xe]] }
  0x41   :  { %v212_v46 = vstv %s1129_s18  ;;  %v215_v47 = vstv %s1131_s19  ;;  %v204_v53 = vstv %s1138_s20  ;;  %v208_v54 = vstv %s1140_s21  ;;  %s1211_s14 = sld [smem:[#allocation2 + $0x2d]]  ;;  %s1216_s16 = sld [smem:[#allocation2 + $0x1e]] }
  0x42   :  { %v167_v48 = vmul.f32 %v166_v21, %v164_v42  ;;  %v171_v49 = vmul.f32 %v170_v30, %v164_v42  ;;  %v198_v50 = vadd.f32 %v197_v43, %v194_v39  ;;  %v213_v51 = vmul.f32 %v212_v46, %v1022_v0  ;;  %s1221_s17 = sld [smem:[#allocation2 + $0x4a]]  ;;  %s1223_s18 = sld [smem:[#allocation2 + $0x4b]] }
  0x43   :  { %v183_v52 = vmax.f32 %v182_v44, 0.0  ;;  %v216_v55 = vmul.f32 %v215_v47, %v1024_v1  ;;  %v219_v59 = vstv %s1143_s22  ;;  %v231_v63 = vstv %s1147_s23  ;;  %s1226_s19 = sld [smem:[#allocation2 + $0x2e]]  ;;  %s1231_s20 = sld [smem:[#allocation2 + $0xf]] }
  0x44   :  { %v168_v56 = vadd.f32 %v167_v48, %v149_v40  ;;  %v172_v57 = vadd.f32 %v171_v49, %v153_v41  ;;  %v201_v58 = vadd.f32 %v200_v45, %v198_v50  ;;  %v223_v3 = vstv %s1152_s24  ;;  %s1233_s21 = sld [smem:[#allocation2 + $0x1f]]  ;;  %s1240_s22 = sld [smem:[#allocation2 + $0x4c]] }
  0x45   :  { %v186_v60 = vmul.f32 %v185_v37, %v183_v52  ;;  %v190_v61 = vmul.f32 %v189_v38, %v183_v52  ;;  %v217_v62 = vadd.f32 %v216_v55, %v213_v51  ;;  %v232_v4 = vmul.f32 %v231_v63, %v1022_v0  ;;  %s1242_s23 = sld [smem:[#allocation2 + $0x4d]]  ;;  %s1245_s24 = sld [smem:[#allocation2 + $0x2f]] }
  0x46   :  { %v202_v2 = vmax.f32 %v201_v58, 0.0  ;;  %v234_v5 = vstv %s1154_s25  ;;  %v227_v12 = vstv %s1160_s26  ;;  %v238_v13 = vstv %s1162_s27  ;;  %s1249_s25 = sld [smem:[#allocation2 + $0x4e]]  ;;  %s1251_s26 = sld [smem:[#allocation2 + $0x4f]] }
  0x47   :  { %v187_v6 = vadd.f32 %v186_v60, %v168_v56  ;;  %v191_v7 = vadd.f32 %v190_v61, %v172_v57  ;;  %v220_v8 = vadd.f32 %v219_v59, %v217_v62  ;;  %v235_v9 = vmul.f32 %v234_v5, %v1024_v1  ;;  %s1256_s27 = sld [smem:[#allocation2 + $0x52]] }
  0x48   :  { %v205_v10 = vmul.f32 %v204_v53, %v202_v2  ;;  %v209_v11 = vmul.f32 %v208_v54, %v202_v2  ;;  %v250_v16 = vstv %s1167_s28  ;;  %v253_v17 = vstv %s1169_s30  ;;  %s1258_s28 = sld [smem:[#allocation2 + $0x62]]  ;;  %s1264_s30 = sld [smem:[#allocation2 + $0x50]] }
  0x49   :  { %v221_v14 = vmax.f32 %v220_v8, 0.0  ;;  %v236_v15 = vadd.f32 %v235_v9, %v232_v4  ;;  %v251_v20 = vmul.f32 %v250_v16, %v1022_v0  ;;  %v254_v21 = vmul.f32 %v253_v17, %v1024_v1 }
  0x4a   :  { %v206_v18 = vadd.f32 %v205_v10, %v187_v6  ;;  %v210_v19 = vadd.f32 %v209_v11, %v191_v7  ;;  %v257_v25 = vstv %s1177_s4  ;;  %v242_v26 = vstv %s1175_s3  ;;  %s1266_s3 = sld [smem:[#allocation2 + $0x51]]  ;;  %s1271_s4 = sld [smem:[#allocation2 + $0x72]] }
  0x4b   :  { %v224_v22 = vmul.f32 %v223_v3, %v221_v14  ;;  %v228_v23 = vmul.f32 %v227_v12, %v221_v14  ;;  %v239_v24 = vadd.f32 %v238_v13, %v236_v15  ;;  %v246_v27 = vstv %s1180_s5  ;;  %s1273_s5 = sld [smem:[#allocation2 + $0x53]] }
  0x4c   :  { %v255_v28 = vadd.f32 %v254_v21, %v251_v20  ;;  %v269_v29 = vstv %s1182_s6  ;;  %v261_v35 = vstv %s1185_s7  ;;  %v265_v36 = vstv %s1190_s8  ;;  %s1279_s6 = sld [smem:[#allocation2 + $0x82]]  ;;  %s1281_s7 = sld [smem:[#allocation2 + $0x63]] }
  0x4d   :  { %v225_v30 = vadd.f32 %v224_v22, %v206_v18  ;;  %v229_v31 = vadd.f32 %v228_v23, %v210_v19  ;;  %v240_v32 = vmax.f32 %v239_v24, 0.0  ;;  %v270_v33 = vmul.f32 %v269_v29, %v1022_v0  ;;  %s1284_s8 = sld [smem:[#allocation2 + $0x83]] }
  0x4e   :  { %v258_v34 = vadd.f32 %v257_v25, %v255_v28  ;;  %v272_v37 = vstv %s1192_s9  ;;  %v276_v41 = vstv %s1195_s10  ;;  %v280_v43 = vstv %s1197_s11  ;;  %s1286_s9 = sld [smem:[#allocation2 + $0x73]]  ;;  %s1289_s10 = sld [smem:[#allocation2 + $0x54]] }
  0x4f   :  { %v243_v38 = vmul.f32 %v242_v26, %v240_v32  ;;  %v247_v39 = vmul.f32 %v246_v27, %v240_v32  ;;  %v273_v40 = vmul.f32 %v272_v37, %v1024_v1  ;;  %v288_v44 = vstv %s1201_s12  ;;  %s1291_s11 = sld [smem:[#allocation2 + $0x64]] }
  0x50   :  { %v259_v42 = vmax.f32 %v258_v34, 0.0  ;;  %v291_v45 = vstv %s1203_s1  ;;  %v289_v49 = vmul.f32 %v288_v44, %v1022_v0  ;;  %v284_v52 = vstv %s1209_s13  ;;  %s1297_s12 = sld [smem:[#allocation2 + $0x84]]  ;;  %s1303_s13 = sld [smem:[#allocation2 + $0x85]] }
  0x51   :  { %v244_v46 = vadd.f32 %v243_v38, %v225_v30  ;;  %v248_v47 = vadd.f32 %v247_v39, %v229_v31  ;;  %v274_v48 = vadd.f32 %v273_v40, %v270_v33  ;;  %v292_v53 = vmul.f32 %v291_v45, %v1024_v1  ;;  %s1299_s1 = sld [smem:[#allocation2 + $0x74]] }
  0x52   :  { %v262_v50 = vmul.f32 %v261_v35, %v259_v42  ;;  %v266_v51 = vmul.f32 %v265_v36, %v259_v42  ;;  %v295_v55 = vstv %s1211_s14  ;;  %v307_v56 = vstv %s1214_s15  ;;  %s1305_s14 = sld [smem:[#allocation2 + $0x86]]  ;;  %s1310_s15 = sld [smem:[#allocation2 + $0x55]] }
  0x53   :  { %v277_v54 = vadd.f32 %v276_v41, %v274_v48  ;;  %v310_v57 = vstv %s1216_s16  ;;  %v293_v58 = vadd.f32 %v292_v53, %v289_v49  ;;  %v299_v59 = vstv %s1221_s17  ;;  %s1312_s16 = sld [smem:[#allocation2 + $0x65]]  ;;  %s1315_s17 = sld [smem:[#allocation2 + $0x87]] }
  0x54   :  { %v303_v60 = vstv %s1223_s18  ;;  %v308_v61 = vmul.f32 %v307_v56, %v1022_v0  ;;  %v263_v62 = vadd.f32 %v262_v50, %v244_v46  ;;  %v267_v63 = vadd.f32 %v266_v51, %v248_v47  ;;  %s1317_s18 = sld [smem:[#allocation2 + $0x75]] }
  0x55   :  { %v278_v2 = vmax.f32 %v277_v54, 0.0  ;;  %v311_v3 = vmul.f32 %v310_v57, %v1024_v1  ;;  %v296_v4 = vadd.f32 %v295_v55, %v293_v58  ;;  %v314_v5 = vstv %s1226_s19  ;;  %s1321_s19 = sld [smem:[#allocation2 + $0x56]] }
  0x56   :  { %v326_v6 = vstv %s1231_s20  ;;  %v329_v7 = vstv %s1233_s21  ;;  %v318_v13 = vstv %s1240_s22  ;;  %v322_v14 = vstv %s1242_s23  ;;  %s1323_s20 = sld [smem:[#allocation2 + $0x66]]  ;;  %s1330_s21 = sld [smem:[#allocation2 + $0x88]] }
  0x57   :  { %v281_v8 = vmul.f32 %v280_v43, %v278_v2  ;;  %v285_v9 = vmul.f32 %v284_v52, %v278_v2  ;;  %v312_v10 = vadd.f32 %v311_v3, %v308_v61  ;;  %v327_v11 = vmul.f32 %v326_v6, %v1022_v0  ;;  %s1332_s22 = sld [smem:[#allocation2 + $0x76]]  ;;  %s1338_s23 = sld [smem:[#allocation2 + $0x89]] }
  0x58   :  { %v297_v12 = vmax.f32 %v296_v4, 0.0  ;;  %v330_v15 = vmul.f32 %v329_v7, %v1024_v1  ;;  %v333_v19 = vstv %s1245_s24  ;;  %v337_v23 = vstv %s1249_s25  ;;  %s1340_s24 = sld [smem:[#allocation2 + $0x57]]  ;;  %s1344_s25 = sld [smem:[#allocation2 + $0x8a]] }
  0x59   :  { %v282_v16 = vadd.f32 %v281_v8, %v263_v62  ;;  %v286_v17 = vadd.f32 %v285_v9, %v267_v63  ;;  %v315_v18 = vadd.f32 %v314_v5, %v312_v10  ;;  %v341_v25 = vstv %s1251_s26  ;;  %s1346_s26 = sld [smem:[#allocation2 + $0x67]] }
  0x5a   :  { %v300_v20 = vmul.f32 %v299_v59, %v297_v12  ;;  %v304_v21 = vmul.f32 %v303_v60, %v297_v12  ;;  %v331_v22 = vadd.f32 %v330_v15, %v327_v11  ;;  %v351_v26 = vstv %s1256_s27  ;;  %s1350_s27 = sld [smem:[#allocation2 + $0x8b]] }
  0x5b   :  { %v316_v24 = vmax.f32 %v315_v18, 0.0  ;;  %v354_v27 = vstv %s1258_s28  ;;  %v352_v31 = vmul.f32 %v351_v26, %v1022_v0  ;;  %v345_v34 = vstv %s1264_s30  ;;  %s1352_s28 = sld [smem:[#allocation2 + $0x77]]  ;;  %s1356_s30 = sld [smem:[#allocation2 + $0x58]] }
  0x5c   :  { %v301_v28 = vadd.f32 %v300_v20, %v282_v16  ;;  %v305_v29 = vadd.f32 %v304_v21, %v286_v17  ;;  %v334_v30 = vadd.f32 %v333_v19, %v331_v22  ;;  %v355_v35 = vmul.f32 %v354_v27, %v1024_v1 }
  0x5d   :  { %v319_v32 = vmul.f32 %v318_v13, %v316_v24  ;;  %v323_v33 = vmul.f32 %v322_v14, %v316_v24  ;;  %v348_v37 = vstv %s1266_s3  ;;  %v358_v38 = vstv %s1271_s4  ;;  %s1358_s3 = sld [smem:[#allocation2 + $0x68]]  ;;  %s1364_s4 = sld [smem:[#allocation2 + $0x8c]] }
  0x5e   :  { %v335_v36 = vmax.f32 %v334_v30, 0.0  ;;  %v370_v39 = vstv %s1273_s5  ;;  %v356_v42 = vadd.f32 %v355_v35, %v352_v31  ;;  %v362_v46 = vstv %s1279_s6  ;;  %s1366_s5 = sld [smem:[#allocation2 + $0x78]]  ;;  %s1372_s6 = sld [smem:[#allocation2 + $0x8d]] }
  0x5f   :  { %v320_v40 = vadd.f32 %v319_v32, %v301_v28  ;;  %v324_v41 = vadd.f32 %v323_v33, %v305_v29  ;;  %v371_v43 = vmul.f32 %v370_v39, %v1022_v0  ;;  %v373_v47 = vstv %s1281_s7  ;;  %s1374_s7 = sld [smem:[#allocation2 + $0x59]] }
  0x60   :  { %v338_v44 = vmul.f32 %v337_v23, %v335_v36  ;;  %v342_v45 = vmul.f32 %v341_v25, %v335_v36  ;;  %v359_v48 = vadd.f32 %v358_v38, %v356_v42  ;;  %v366_v49 = vstv %s1284_s8  ;;  %s1378_s8 = sld [smem:[#allocation2 + $0x8e]] }
  0x61   :  { %v374_v50 = vmul.f32 %v373_v47, %v1024_v1  ;;  %v377_v51 = vstv %s1286_s9  ;;  %v389_v54 = vstv %s1289_s10  ;;  %v392_v55 = vstv %s1291_s11  ;;  %s1380_s9 = sld [smem:[#allocation2 + $0x69]]  ;;  %s1385_s10 = sld [smem:[#allocation2 + $0x8f]] }
  0x62   :  { %v339_v52 = vadd.f32 %v338_v44, %v320_v40  ;;  %v343_v53 = vadd.f32 %v342_v45, %v324_v41  ;;  %v360_v56 = vmax.f32 %v359_v48, 0.0  ;;  %v390_v58 = vmul.f32 %v389_v54, %v1022_v0  ;;  %s1387_s11 = sld [smem:[#allocation2 + $0x79]] }
  0x63   :  { %v375_v57 = vadd.f32 %v374_v50, %v371_v43  ;;  %v393_v59 = vmul.f32 %v392_v55, %v1024_v1  ;;  %v381_v62 = vstv %s1297_s12  ;;  %v396_v63 = vstv %s1299_s1  ;;  %s1390_s12 = sld [smem:[#allocation2 + $0x5a]] }
  0x64   :  { %v346_v60 = vadd.f32 %v345_v34, %v339_v52  ;;  %v349_v61 = vadd.f32 %v348_v37, %v343_v53  ;;  %v385_v3 = vstv %s1303_s13  ;;  %v400_v5 = vstv %s1305_s14  ;;  %s1392_s1 = sld [smem:[#allocation2 + $0x6a]]  ;;  %s1398_s13 = sld [smem:[#allocation2 + $0x90]] }
  0x65   :  { %v378_v2 = vadd.f32 %v377_v51, %v375_v57  ;;  %v394_v4 = vadd.f32 %v393_v59, %v390_v58  ;;  %v363_v6 = vmul.f32 %v362_v46, %v360_v56  ;;  %v367_v7 = vmul.f32 %v366_v49, %v360_v56  ;;  %s1400_s14 = sld [smem:[#allocation2 + $0x7a]] }
  0x66   :  { %v408_v8 = vstv %s1310_s15  ;;  %v411_v9 = vstv %s1312_s16  ;;  %660 = vst [vmem:[#allocation7] sm:$0xff] %v346_v60  ;;  %662 = vst [vmem:[#allocation7 + $0x8] sm:$0xff] %v349_v61  ;;  %v404_v14 = vstv %s1315_s17  ;;  %v415_v15 = vstv %s1317_s18  ;;  %s1406_s15 = sld [smem:[#allocation2 + $0x91]]  ;;  %s1408_s16 = sld [smem:[#allocation2 + $0x5b]] }
  0x67   :  { %v379_v10 = vmax.f32 %v378_v2, 0.0  ;;  %v397_v11 = vadd.f32 %v396_v63, %v394_v4  ;;  %v409_v12 = vmul.f32 %v408_v8, %v1022_v0  ;;  %v412_v13 = vmul.f32 %v411_v9, %v1024_v1  ;;  %s1412_s17 = sld [smem:[#allocation2 + $0x92]]  ;;  %s1414_s18 = sld [smem:[#allocation2 + $0x6b]] }
  0x68   :  { %v427_v16 = vstv %s1321_s19  ;;  %v430_v17 = vstv %s1323_s20  ;;  %v419_v22 = vstv %s1330_s21  ;;  %v434_v25 = vstv %s1332_s22  ;;  %s1419_s19 = sld [smem:[#allocation2 + $0x93]]  ;;  %s1424_s21 = sld [smem:[#allocation2 + $0x5c]] }
  0x69   :  { %v382_v18 = vmul.f32 %v381_v62, %v379_v10  ;;  %v386_v19 = vmul.f32 %v385_v3, %v379_v10  ;;  %v398_v20 = vmax.f32 %v397_v11, 0.0  ;;  %v413_v21 = vadd.f32 %v412_v13, %v409_v12  ;;  %s1421_s20 = sld [smem:[#allocation2 + $0x7b]]  ;;  %s1426_s22 = sld [smem:[#allocation2 + $0x6c]] }
  0x6a   :  { %v428_v23 = vmul.f32 %v427_v16, %v1022_v0  ;;  %v431_v24 = vmul.f32 %v430_v17, %v1024_v1  ;;  %v423_v31 = vstv %s1338_s23  ;;  %v446_v33 = vstv %s1340_s24  ;;  %s1432_s23 = sld [smem:[#allocation2 + $0x94]] }
  0x6b   :  { %v383_v26 = vadd.f32 %v382_v18, %v363_v6  ;;  %v387_v27 = vadd.f32 %v386_v19, %v367_v7  ;;  %v401_v28 = vmul.f32 %v400_v5, %v398_v20  ;;  %v405_v29 = vmul.f32 %v404_v14, %v398_v20  ;;  %s1434_s24 = sld [smem:[#allocation2 + $0x7c]] }
  0x6c   :  { %v416_v30 = vadd.f32 %v415_v15, %v413_v21  ;;  %v432_v32 = vadd.f32 %v431_v24, %v428_v23  ;;  %v438_v35 = vstv %s1344_s25  ;;  %v447_v36 = vmul.f32 %v446_v33, %v1022_v0  ;;  %s1440_s25 = sld [smem:[#allocation2 + $0x95]] }
  0x6d   :  { %v402_v34 = vadd.f32 %v401_v28, %v383_v26  ;;  %v449_v37 = vstv %s1346_s26  ;;  %v406_v38 = vadd.f32 %v405_v29, %v387_v27  ;;  %v442_v42 = vstv %s1350_s27  ;;  %s1442_s26 = sld [smem:[#allocation2 + $0x5d]]  ;;  %s1446_s27 = sld [smem:[#allocation2 + $0x96]] }
  0x6e   :  { %v417_v39 = vmax.f32 %v416_v30, 0.0  ;;  %v435_v40 = vadd.f32 %v434_v25, %v432_v32  ;;  %v450_v41 = vmul.f32 %v449_v37, %v1024_v1  ;;  %v453_v43 = vstv %s1352_s28  ;;  %s1448_s28 = sld [smem:[#allocation2 + $0x6d]] }
  0x6f   :  { %v465_v44 = vstv %s1356_s30  ;;  %v468_v45 = vstv %s1358_s3  ;;  %v457_v50 = vstv %s1364_s4  ;;  %v472_v53 = vstv %s1366_s5  ;;  %s1453_s30 = sld [smem:[#allocation2 + $0x97]]  ;;  %s1455_s3 = sld [smem:[#allocation2 + $0x7d]] }
  0x70   :  { %v420_v46 = vmul.f32 %v419_v22, %v417_v39  ;;  %v424_v47 = vmul.f32 %v423_v31, %v417_v39  ;;  %v436_v48 = vmax.f32 %v435_v40, 0.0  ;;  %v451_v49 = vadd.f32 %v450_v41, %v447_v36  ;;  %s1458_s4 = sld [smem:[#allocation2 + $0x5e]] }
  0x71   :  { %v466_v51 = vmul.f32 %v465_v44, %v1022_v0  ;;  %v469_v52 = vmul.f32 %v468_v45, %v1024_v1  ;;  %v461_v59 = vstv %s1372_s6  ;;  %v484_v61 = vstv %s1374_s7  ;;  %s1460_s5 = sld [smem:[#allocation2 + $0x6e]]  ;;  %s1466_s6 = sld [smem:[#allocation2 + $0x98]] }
  0x72   :  { %v421_v54 = vadd.f32 %v420_v46, %v402_v34  ;;  %v425_v55 = vadd.f32 %v424_v47, %v406_v38  ;;  %v439_v56 = vmul.f32 %v438_v35, %v436_v48  ;;  %v443_v57 = vmul.f32 %v442_v42, %v436_v48  ;;  %s1468_s7 = sld [smem:[#allocation2 + $0x7e]] }
  0x73   :  { %v454_v58 = vadd.f32 %v453_v43, %v451_v49  ;;  %v470_v60 = vadd.f32 %v469_v52, %v466_v51  ;;  %v476_v63 = vstv %s1378_s8  ;;  %v485_v2 = vmul.f32 %v484_v61, %v1022_v0  ;;  %s1474_s8 = sld [smem:[#allocation2 + $0x99]] }
  0x74   :  { %v440_v62 = vadd.f32 %v439_v56, %v421_v54  ;;  %v487_v3 = vstv %s1380_s9  ;;  %v444_v4 = vadd.f32 %v443_v57, %v425_v55  ;;  %v480_v8 = vstv %s1385_s10  ;;  %s1476_s9 = sld [smem:[#allocation2 + $0x5f]]  ;;  %s1480_s10 = sld [smem:[#allocation2 + $0x9a]] }
  0x75   :  { %v455_v5 = vmax.f32 %v454_v58, 0.0  ;;  %v473_v6 = vadd.f32 %v472_v53, %v470_v60  ;;  %v488_v7 = vmul.f32 %v487_v3, %v1024_v1  ;;  %v491_v9 = vstv %s1387_s11  ;;  %s1482_s11 = sld [smem:[#allocation2 + $0x6f]] }
  0x76   :  { %v503_v10 = vstv %s1390_s12  ;;  %v506_v11 = vstv %s1392_s1  ;;  %v495_v16 = vstv %s1398_s13  ;;  %v510_v19 = vstv %s1400_s14  ;;  %s1487_s12 = sld [smem:[#allocation2 + $0x9b]]  ;;  %s1489_s1 = sld [smem:[#allocation2 + $0x7f]] }
  0x77   :  { %v458_v12 = vmul.f32 %v457_v50, %v455_v5  ;;  %v462_v13 = vmul.f32 %v461_v59, %v455_v5  ;;  %v474_v14 = vmax.f32 %v473_v6, 0.0  ;;  %v489_v15 = vadd.f32 %v488_v7, %v485_v2  ;;  %s1494_s13 = sld [smem:[#allocation2 + $0x60]] }
  0x78   :  { %v504_v17 = vmul.f32 %v503_v10, %v1022_v0  ;;  %v507_v18 = vmul.f32 %v506_v11, %v1024_v1  ;;  %v499_v25 = vstv %s1406_s15  ;;  %v522_v27 = vstv %s1408_s16  ;;  %s1496_s14 = sld [smem:[#allocation2 + $0x70]]  ;;  %v898_v10 = vld [vmem:[#allocation6] sm:$0xff]  ;;  %s1507_s16 = sld [smem:[#allocation2 + $0x9c]] }
  0x79   :  { %v459_v20 = vadd.f32 %v458_v12, %v440_v62  ;;  %v463_v21 = vadd.f32 %v462_v13, %v444_v4  ;;  %v477_v22 = vmul.f32 %v476_v63, %v474_v14  ;;  %v481_v23 = vmul.f32 %v480_v8, %v474_v14  ;;  %v1491_v62 = vld [vmem:[#allocation6 + $0x8] sm:$0xff]  ;;  %s1502_s15 = sld [smem:[#allocation2 + $0x80]] }
  0x7a   :  { %v492_v24 = vadd.f32 %v491_v9, %v489_v15  ;;  %v508_v26 = vadd.f32 %v507_v18, %v504_v17  ;;  %v514_v29 = vstv %s1412_s17  ;;  %v523_v30 = vmul.f32 %v522_v27, %v1022_v0  ;;  %s1509_s17 = sld [smem:[#allocation2 + $0x61]] }
  0x7b   :  { %v478_v28 = vadd.f32 %v477_v22, %v459_v20  ;;  %v525_v31 = vstv %s1414_s18  ;;  %v482_v32 = vadd.f32 %v481_v23, %v463_v21  ;;  %v518_v36 = vstv %s1419_s19  ;;  %s1513_s18 = sld [smem:[#allocation2 + $0x9d]]  ;;  %s1515_s19 = sld [smem:[#allocation2 + $0x71]] }
  0x7c   :  { %v493_v33 = vmax.f32 %v492_v24, 0.0  ;;  %v511_v34 = vadd.f32 %v510_v19, %v508_v26  ;;  %v526_v35 = vmul.f32 %v525_v31, %v1024_v1  ;;  %v529_v37 = vstv %s1421_s20  ;;  %s1519_s20 = sld [smem:[#allocation2 + $0x9e]] }
  0x7d   :  { %v541_v38 = vstv %s1424_s21  ;;  %v544_v39 = vstv %s1426_s22  ;;  %v533_v44 = vstv %s1432_s23  ;;  %v548_v47 = vstv %s1434_s24  ;;  %s1522_s21 = sld [smem:[#allocation2 + $0x9f]]  ;;  %s1524_s22 = sld [smem:[#allocation2 + $0x81]] }
  0x7e   :  { %v496_v40 = vmul.f32 %v495_v16, %v493_v33  ;;  %v500_v41 = vmul.f32 %v499_v25, %v493_v33  ;;  %v512_v42 = vmax.f32 %v511_v34, 0.0  ;;  %v527_v43 = vadd.f32 %v526_v35, %v523_v30  ;;  %s880_s23 = sld [smem:[#allocation2 + $0xa0]]  ;;  %s881_s24 = sld [smem:[#allocation2 + $0xa1]] }
  0x7f   :  { %v542_v45 = vmul.f32 %v541_v38, %v1022_v0  ;;  %v545_v46 = vmul.f32 %v544_v39, %v1024_v1  ;;  %v537_v53 = vstv %s1440_s25  ;;  %v560_v55 = vstv %s1442_s26  ;;  %s882_s25 = sld [smem:[#allocation2 + $0xa2]]  ;;  %s883_s26 = sld [smem:[#allocation2 + $0xa3]] }
  0x80   :  { %v497_v48 = vadd.f32 %v496_v40, %v478_v28  ;;  %v501_v49 = vadd.f32 %v500_v41, %v482_v32  ;;  %v515_v50 = vmul.f32 %v514_v29, %v512_v42  ;;  %v519_v51 = vmul.f32 %v518_v36, %v512_v42 }
  0x81   :  { %v530_v52 = vadd.f32 %v529_v37, %v527_v43  ;;  %v546_v54 = vadd.f32 %v545_v46, %v542_v45  ;;  %v552_v56 = vstv %s1446_s27  ;;  %v561_v57 = vmul.f32 %v560_v55, %v1022_v0  ;;  %s963_s27 = smov [#allocation7]  }
  0x82   :  { %v516_v1 = vadd.f32 %v515_v50, %v497_v48  ;;  %v563_v58 = vstv %s1448_s28  ;;  %v520_v59 = vadd.f32 %v519_v51, %v501_v49  ;;  %v556_v2 = vstv %s1453_s30  ;;  %s708_s28 = sshll.u32 %s963_s27, 4  ;;  %s709_s28 = int_to_ptr.vmem [resolvable:$true] %s708_s28 }
  0x83   :  { %v531_v60 = vmax.f32 %v530_v52, 0.0  ;;  %v549_v61 = vadd.f32 %v548_v47, %v546_v54  ;;  %v564_v63 = vmul.f32 %v1491_v62, %v563_v58  ;;  %v567_v0 = vstv %s1455_s3  ;;  %s931_s30 = scalar_lea.vmem %s709_s28, 512  ;;  %p936_p12 = scmp.lt.s32.totalorder %s709_s28, %s709_s28 }
  0x84   :  { %v579_v3 = vstv %s1458_s4  ;;  %v582_v4 = vstv %s1460_s5  ;;  %v571_v9 = vstv %s1466_s6  ;;  %v586_v13 = vstv %s1468_s7  ;;  %p932_p11 = scmp.ne.s32.totalorder %s709_s28, %s931_s30  ;;  %p937_p13 = scmp.lt.s32.totalorder %s931_s30, %s931_s30 }
  0x85   :  { %v534_v5 = vmul.f32 %v533_v44, %v531_v60  ;;  %v538_v6 = vmul.f32 %v537_v53, %v531_v60  ;;  %v550_v7 = vmax.f32 %v549_v61, 0.0  ;;  %v565_v8 = vadd.f32 %v564_v63, %v561_v57 }
  0x86   :  { %v580_v11 = vmul.f32 %v898_v10, %v579_v3  ;;  %v583_v12 = vmul.f32 %v1491_v62, %v582_v4  ;;  %v575_v19 = vstv %s1474_s8  ;;  %v598_v21 = vstv %s1476_s9  ;;  %p938_p0 = por %p937_p13, %p936_p12 }
  0x87   :  { %v535_v14 = vadd.f32 %v534_v5, %v516_v1  ;;  %v539_v15 = vadd.f32 %v538_v6, %v520_v59  ;;  %v553_v16 = vmul.f32 %v552_v56, %v550_v7  ;;  %v557_v17 = vmul.f32 %v556_v2, %v550_v7 }
  0x88   :  { %v568_v18 = vadd.f32 %v567_v0, %v565_v8  ;;  %v584_v20 = vadd.f32 %v583_v12, %v580_v11  ;;  %v590_v23 = vstv %s1480_s10  ;;  %v599_v24 = vmul.f32 %v898_v10, %v598_v21  ;;  %p939_p1 = pnand %p938_p0, %p932_p11 }
  0x89   :  { %v554_v22 = vadd.f32 %v553_v16, %v535_v14  ;;  %v601_v25 = vstv %s1482_s11  ;;  %v558_v26 = vadd.f32 %v557_v17, %v539_v15  ;;  %v594_v30 = vstv %s1487_s12 }
  0x8a   :  { %v569_v27 = vmax.f32 %v568_v18, 0.0  ;;  %v587_v28 = vadd.f32 %v586_v13, %v584_v20  ;;  %v602_v29 = vmul.f32 %v1491_v62, %v601_v25  ;;  %v605_v31 = vstv %s1489_s1 }
  0x8b   :  { %v617_v32 = vstv %s1494_s13  ;;  %v620_v33 = vstv %s1496_s14  ;;  %v624_v40 = vstv %s1502_s15  ;;  %v609_v46 = vstv %s1507_s16 }
  0x8c   :  { %v572_v34 = vmul.f32 %v571_v9, %v569_v27  ;;  %v576_v35 = vmul.f32 %v575_v19, %v569_v27  ;;  %v588_v36 = vmax.f32 %v587_v28, 0.0  ;;  %v603_v37 = vadd.f32 %v602_v29, %v599_v24 }
  0x8d   :  { %v618_v38 = vmul.f32 %v898_v10, %v617_v32  ;;  %v621_v39 = vmul.f32 %v1491_v62, %v620_v33  ;;  %v636_v48 = vstv %s1509_s17  ;;  %v613_v50 = vstv %s1513_s18 }
  0x8e   :  { %v573_v41 = vadd.f32 %v572_v34, %v554_v22  ;;  %v577_v42 = vadd.f32 %v576_v35, %v558_v26  ;;  %v591_v43 = vmul.f32 %v590_v23, %v588_v36  ;;  %v595_v44 = vmul.f32 %v594_v30, %v588_v36 }
  0x8f   :  { %v606_v45 = vadd.f32 %v605_v31, %v603_v37  ;;  %v622_v47 = vadd.f32 %v621_v39, %v618_v38  ;;  %v637_v51 = vmul.f32 %v898_v10, %v636_v48  ;;  %v639_v52 = vstv %s1515_s19 }
  0x90   :  { %v592_v49 = vadd.f32 %v591_v43, %v573_v41  ;;  %v596_v53 = vadd.f32 %v595_v44, %v577_v42  ;;  %v640_v1 = vmul.f32 %v1491_v62, %v639_v52  ;;  %v628_v56 = vstv %s1519_s20 }
  0x91   :  { %v607_v54 = vmax.f32 %v606_v45, 0.0  ;;  %v625_v55 = vadd.f32 %v624_v40, %v622_v47  ;;  %v632_v57 = vstv %s1522_s21  ;;  %v643_v58 = vstv %s1524_s22 }
  0x92   :  { %v641_v63 = vadd.f32 %v640_v1, %v637_v51  ;;  %v647_v6 = vstv %s880_s23  ;;  %v651_v7 = vstv %s881_s24  ;;  %v655_v12 = vstv %s882_s25 }
  0x93   :  { %v610_v59 = vmul.f32 %v609_v46, %v607_v54  ;;  %v614_v60 = vmul.f32 %v613_v50, %v607_v54  ;;  %v626_v61 = vmax.f32 %v625_v55, 0.0  ;;  %v658_v13 = vstv %s883_s26 }
  0x94   :  { %v644_v5 = vadd.f32 %v643_v58, %v641_v63 }
  0x95   :  { %v611_v2 = vadd.f32 %v610_v59, %v592_v49  ;;  %v615_v0 = vadd.f32 %v614_v60, %v596_v53  ;;  %v629_v3 = vmul.f32 %v628_v56, %v626_v61  ;;  %v633_v4 = vmul.f32 %v632_v57, %v626_v61 }
  0x96   :  { %v645_v10 = vmax.f32 %v644_v5, 0.0 }
  0x97   :  { %v630_v8 = vadd.f32 %v629_v3, %v611_v2  ;;  %v634_v9 = vadd.f32 %v633_v4, %v615_v0 }
  0x98   :  { %v648_v62 = vmul.f32 %v647_v6, %v645_v10  ;;  %v652_v11 = vmul.f32 %v651_v7, %v645_v10 }
  0x9a   :  { %v649_v14 = vadd.f32 %v648_v62, %v630_v8  ;;  %v653_v15 = vadd.f32 %v652_v11, %v634_v9 }
  0x9c   :  { %v656_v16 = vadd.f32 %v655_v12, %v649_v14  ;;  %v659_v17 = vadd.f32 %v658_v13, %v653_v15 }
  0x9e   :  { %v666_v18 = vand.u32 2147483647, %v656_v16  ;;  %v686_v19 = vand.u32 2147483647, %v659_v17  ;;  %v663_v36 = vmax.f32 %v656_v16, 0.0  ;;  %v683_v40 = vmax.f32 %v659_v17, 0.0 }
  0x9f   :  { %vm664_vm2 = vcmp.ne.f32.partialorder %v656_v16, %v656_v16  ;;  %vm684_vm3 = vcmp.ne.f32.partialorder %v659_v17, %v659_v17 }
  0xa0   :  { %v667_v20 = vsub.f32 0.0, %v666_v18  ;;  %v687_v21 = vsub.f32 0.0, %v686_v19 }
  0xa2   :  { %v668_v22 = vmul.f32 1.442695, %v667_v20  ;;  %v688_v23 = vmul.f32 1.442695, %v687_v21 }
  0xa4   :  { %889 = vpow2.f32 %v668_v22 }
  0xa5   :  { %891 = vpow2.f32 %v688_v23 }
  0xae   :  { %v890_v24 = vpop.eup %889 }
  0xaf   :  { %v892_v25 = vpop.eup %891  ;;  %v670_v26 = vadd.f32 1.0, %v890_v24  ;;  %v673_v28 = vmul.f32 -0.5, %v890_v24  ;;  %v676_v31 = vand.u32 2147483647, %v890_v24 }
  0xb0   :  { %v690_v27 = vadd.f32 1.0, %v892_v25  ;;  %v693_v29 = vmul.f32 -0.5, %v892_v25  ;;  %v696_v33 = vand.u32 2147483647, %v892_v25 }
  0xb1   :  { %893 = vlog2.f32 %v670_v26  ;;  %v674_v30 = vadd.f32 1.0, %v673_v28  ;;  %vm677_vm0 = vcmp.lt.f32.partialorder %v676_v31, 0.0004427343 }
  0xb2   :  { %895 = vlog2.f32 %v690_v27  ;;  %v694_v32 = vadd.f32 1.0, %v693_v29  ;;  %vm697_vm1 = vcmp.lt.f32.partialorder %v696_v33, 0.0004427343 }
  0xb3   :  { %v675_v34 = vmul.f32 %v890_v24, %v674_v30 }
  0xb4   :  { %v695_v37 = vmul.f32 %v892_v25, %v694_v32 }
  0xbb   :  { %v894_v35 = vpop.eup %893 }
  0xbc   :  { %v896_v38 = vpop.eup %895  ;;  %v672_v39 = vmul.f32 0.6931472, %v894_v35 }
  0xbd   :  { %v692_v41 = vmul.f32 0.6931472, %v896_v38 }
  0xbe   :  { %v678_v42 = vsel %vm677_vm0, %v675_v34, %v672_v39 }
  0xbf   :  { %v679_v43 = vadd.f32 %v678_v42, %v663_v36  ;;  %v698_v44 = vsel %vm697_vm1, %v695_v37, %v692_v41 }
  0xc0   :  { %v699_v45 = vadd.f32 %v698_v44, %v683_v40 }
  0xc1   :  { %v680_v46 = vsel %vm664_vm2, %v656_v16, %v679_v43 }
  0xc2   :  { %682 = vst [vmem:[#allocation7 + $0x10] sm:$0xff] %v680_v46  ;;  %v700_v47 = vsel %vm684_vm3, %v659_v17, %v699_v45 }
  0xc3   :  { %702 = vst [vmem:[#allocation7 + $0x18] sm:$0xff] %v700_v47 }
  0xc4   :  { %942 = shalt.err (!%p939_p1)
}
  0xc5   :  { %s943_s5 = scalar_lea.hbm %s1557_s2, 512 }
  0xc6   :  { %p944_p2 = scmp.ne.s32.totalorder %s1557_s2, %s943_s5  ;;  %p947_p3 = scmp.lt.u32.totalorder %s943_s5, %s1557_s2 }
  0xc8   :  { %p949_p4 = pnand %p947_p3, %p944_p2 }
  0xca   :  { %952 = shalt.err (!%p949_p4)
}
  0xcb   :  { %714 = dma.vmem_to_hbm [thread:$0]  %s709_s28, 512, %s1557_s2, [#allocation4], %s961_s0, %s961_s0, %s962_s29  }
  0xcc   :  { %957 = dma.done.wait [#allocation4], 512  }
  0xcd   :  { %958 = vsyncadd [#allocation4], 4294966784 }
  0xce   :  { %718 = vsyncpa [#allocation3], 1 }
  0xcf   :  { %719 = vsyncpa [#allocation4], 1 }
  0xd0   :  { %720 = vsyncpa [#allocation5], 1 }

</bundles_post_ra>
